<compile_context>
chip_gen: v7x
topology: tpu7x:2x2x1
jax: 0.10.0
libtpu: 0.0.40
codegen_flags: <defaults>
</compile_context>

<pallas_src>
import numpy as np
import jax
import jax.numpy as jnp
from jax.experimental import pallas as pl
from jax.experimental.pallas import tpu as pltpu

IMAGENET_MEAN = (0.485, 0.456, 0.406)
IMAGENET_STD = (0.229, 0.224, 0.225)


# ----------------------------------------------------------------------------
# Host-side (numpy) construction of the per-crop linear operators.
# ----------------------------------------------------------------------------
def _resize_matrix(out_size, in_size):
    # Bilinear resample matrix R: (out, in), rows sum to 1.
    i = np.arange(out_size, dtype=np.float64)
    src = np.clip((i + 0.5) * in_size / out_size - 0.5, 0.0, in_size - 1)
    lo = np.floor(src).astype(np.int64)
    hi = np.minimum(lo + 1, in_size - 1)
    w_hi = src - lo
    R = np.zeros((out_size, in_size), np.float64)
    R[np.arange(out_size), lo] += 1.0 - w_hi
    R[np.arange(out_size), hi] += w_hi
    return R


def _blur_matrix(size, sigma, radius=2):
    # Row-normalized banded gaussian blur matrix (size, size).
    idx = np.arange(size)
    d = idx[None, :] - idx[:, None]
    K = np.exp(-(d.astype(np.float64) ** 2) / (2.0 * sigma * sigma))
    K = np.where(np.abs(d) <= radius, K, 0.0)
    return K / K.sum(axis=1, keepdims=True)


def _flip_matrix(size, do_flip):
    P = np.eye(size)
    return P[:, ::-1].copy() if do_flip else P


def _channel_mix(C, brightness, gray_blend):
    # brightness * ((1-g) I + g * ones @ luma): folds ColorJitter(brightness)
    # and the RandomGrayscale blend into one CxC channel-mixing matrix.
    if C == 3:
        luma = np.array([0.299, 0.587, 0.114])
    else:
        luma = np.full((C,), 1.0 / C)     # generic fallback for C != 3
    M = (1.0 - gray_blend) * np.eye(C) + gray_blend * np.outer(np.ones(C), luma)
    return brightness * M


def _crop_operators(C, in_h, in_w, out_size, sigma, do_flip, brightness,
                    gray_blend, mean, std):
    # Compose order follows the torchvision pipeline:
    #   resize (crop approx) -> flip -> brightness/grayscale -> blur
    Rh = _resize_matrix(out_size, in_h)            # (Ho, Hi)
    Rw = _resize_matrix(out_size, in_w)            # (Wo, Wi)
    Bh = _blur_matrix(out_size, sigma)             # (Ho, Ho)
    Bw = _blur_matrix(out_size, sigma)             # (Wo, Wo)
    P = _flip_matrix(out_size, do_flip)            # (Wo, Wo)
    Ah = Bh @ Rh                                   # (Ho, Hi)   row operator
    Aw = Rw.T @ P @ Bw.T                           # (Wi, Wo)   col operator
    M = _channel_mix(C, brightness, gray_blend)    # (C, C)
    A_left = np.kron(M, Ah)                        # (C*Ho, C*Hi)

    # Row-expanded Normalize(mean, std) constants: col 0 = mean, col 1 = 1/std.
    mean_rep = np.repeat(np.asarray(mean, np.float64), out_size)
    inv_std_rep = np.repeat(1.0 / np.asarray(std, np.float64), out_size)
    nrm = np.stack([mean_rep, inv_std_rep], axis=1)        # (C*Ho, 2)

    return (jnp.asarray(A_left, dtype=jnp.bfloat16),
            jnp.asarray(Aw, dtype=jnp.bfloat16),
            jnp.asarray(nrm, dtype=jnp.float32))


# ----------------------------------------------------------------------------
# Fused Pallas kernel: all crops for one batch element per grid step.
# ----------------------------------------------------------------------------
def _make_fused_kernel(num_crops, crop_meta, sol_thresh):
    K = num_crops

    def kernel(*refs):
        x_ref = refs[0]                       # (1, C*Hi, Wi)
        crop_refs = refs[1:1 + 3 * K]         # per crop: A_left, A_w, nrm
        out_refs = refs[1 + 3 * K:]           # per crop: (1, C*Ho, Wo)

        # Channel-packed image slab; bf16 for the MXU path.
        xf = x_ref[0].astype(jnp.bfloat16)    # (C*Hi, Wi)

        for k in range(K):                    # static unroll over crops
            solarize = crop_meta[k][2]
            al = crop_refs[3 * k][...]        # (C*Ho, C*Hi) bf16
            aw = crop_refs[3 * k + 1][...]    # (Wi, Wo)     bf16
            nrm = crop_refs[3 * k + 2][...]   # (C*Ho, 2)    f32

            # Geometric + photometric-linear op: two MXU matmuls (f32 accum).
            y = jnp.dot(al, xf, preferred_element_type=jnp.float32)   # (C*Ho, Wi)
            y = jnp.dot(y.astype(jnp.bfloat16), aw,
                        preferred_element_type=jnp.float32)           # (C*Ho, Wo)

            # TODO(synk): torchvision clamps right after ColorJitter; clamping
            # after the (linear) resample/blur is a close approximation.
            y = jnp.clip(y, 0.0, 1.0)

            if solarize:   # RandomSolarization (deterministic flag per crop)
                y = jnp.where(y > jnp.float32(sol_thresh), 1.0 - y, y)

            # Normalize(mean, std) via the row-expanded per-channel constants.
            y = (y - nrm[:, 0:1]) * nrm[:, 1:2]

            out_refs[k][0] = y.astype(out_refs[k].dtype)   # one wide store

    return kernel


def _dino_crops_fused(images, crop_params, crop_meta, sol_thresh):
    B, C, Hi, Wi = images.shape
    K = len(crop_meta)
    kernel = _make_fused_kernel(K, crop_meta, sol_thresh)

    # Channel-packed slab (XLA reshape outside the kernel, free).
    x_flat = images.reshape(B, C * Hi, Wi)

    in_specs = [pl.BlockSpec((1, C * Hi, Wi), lambda b: (b, 0, 0))]
    flat_args = [x_flat]
    for (al, aw, nrm) in crop_params:
        in_specs.append(pl.BlockSpec(al.shape, lambda b: (0, 0)))
        in_specs.append(pl.BlockSpec(aw.shape, lambda b: (0, 0)))
        in_specs.append(pl.BlockSpec(nrm.shape, lambda b: (0, 0)))
        flat_args.extend([al, aw, nrm])

    out_shape = tuple(
        jax.ShapeDtypeStruct((B, C * Ho, Wo), jnp.float32)
        for (Ho, Wo, _) in crop_meta)
    out_specs = tuple(
        pl.BlockSpec((1, C * Ho, Wo), lambda b: (b, 0, 0))
        for (Ho, Wo, _) in crop_meta)

    outs = pl.pallas_call(
        kernel,
        out_shape=out_shape,
        grid=(B,),
        in_specs=in_specs,
        out_specs=out_specs,
        compiler_params=pltpu.CompilerParams(
            dimension_semantics=("parallel",)),
    )(*flat_args)

    # Unpack the channel-packed slabs back to NCHW (XLA reshape, free).
    return [o.reshape(B, C, Ho, Wo)
            for o, (Ho, Wo, _) in zip(outs, crop_meta)]


# ----------------------------------------------------------------------------
# DinoCollateFunction forward.
# ----------------------------------------------------------------------------
class DinoCollateFunctionPallas:
    """Forward pass of DinoCollateFunction with deterministic augmentations."""

    def __init__(self, global_crops_scale=(0.4, 1.0), local_crops_scale=(0.05, 0.4),
                 local_crops_number=2, local_crops_size=16, input_size=32,
                 cj_bright=0.4, random_gray_scale=0.2, random_solarization=0.2,
                 normalize=None):
        del global_crops_scale, local_crops_scale, random_solarization
        input_size_ = max(input_size) if isinstance(input_size, tuple) else input_size
        normalize = normalize or {"mean": IMAGENET_MEAN, "std": IMAGENET_STD}
        self.mean = tuple(normalize["mean"])
        self.std = tuple(normalize["std"])
        self.sol_thresh = 128.0 / 255.0

        # Deterministic per-crop configuration (randomness of the torchvision
        # transforms replaced by fixed parameters).
        self.crop_cfg = [
            # global_transfo1: GaussianBlur(p=1.0), no solarize
            dict(out=input_size_, sigma=1.0, flip=False,
                 bright=1.0 + cj_bright, gray=random_gray_scale, sol=False),
            # global_transfo2: light blur + RandomSolarization
            dict(out=input_size_, sigma=0.3, flip=True,
                 bright=1.0 - cj_bright, gray=random_gray_scale, sol=True),
        ]
        for i in range(local_crops_number):
            self.crop_cfg.append(
                dict(out=local_crops_size, sigma=0.5, flip=(i % 2 == 0),
                     bright=1.0, gray=random_gray_scale, sol=False))
        self._cache = {}

    def _operators(self, C, Hi, Wi):
        key = (C, Hi, Wi)
        if key not in self._cache:
            mean = self.mean if C == 3 else (0.5,) * C
            std = self.std if C == 3 else (0.25,) * C
            params, meta = [], []
            for cfg in self.crop_cfg:
                params.append(_crop_operators(
                    C, Hi, Wi, cfg["out"], cfg["sigma"], cfg["flip"],
                    cfg["bright"], cfg["gray"], mean, std))
                meta.append((cfg["out"], cfg["out"], cfg["sol"]))
            self._cache[key] = (params, tuple(meta))
        return self._cache[key]

    def __call__(self, batch_images, batch_labels, batch_fnames):
        # batch_images: (B, C, H, W) float32 in [0, 1]   (ToTensor output)
        B, C, Hi, Wi = batch_images.shape
        params, meta = self._operators(C, Hi, Wi)
        crops = _dino_crops_fused(batch_images, params, meta, self.sol_thresh)
        labels = jnp.asarray(batch_labels, dtype=jnp.int32)  # LongTensor analog
        fnames = list(batch_fnames)
        transforms = (crops[:2], crops)
        return transforms, labels, fnames


# ----------------------------------------------------------------------------
if __name__ == "__main__":
    key = jax.random.PRNGKey(0)
    B, C, H, W = 2, 3, 32, 32
    images = jax.random.uniform(key, (B, C, H, W), dtype=jnp.float32)
    labels = np.arange(B, dtype=np.int32)
    fnames = [f"img_{i}.jpg" for i in range(B)]

    collate = DinoCollateFunctionPallas(
        local_crops_number=2, local_crops_size=16, input_size=32)

    (global_crops, all_crops), out_labels, out_fnames = collate(
        images, labels, fnames)

    for crop in all_crops:
        jax.block_until_ready(crop)
    jax.block_until_ready(out_labels)

    # sanity checks on shapes / values
    assert all_crops[0].shape == (B, C, 32, 32)
    assert all_crops[1].shape == (B, C, 32, 32)
    assert all_crops[2].shape == (B, C, 16, 16)
    assert all_crops[3].shape == (B, C, 16, 16)
    assert len(global_crops) == 2
    assert out_labels.shape == (B,)
    assert out_fnames == fnames
    assert all(bool(jnp.isfinite(c).all()) for c in all_crops)

    print("KERNEL_OK")
</pallas_src>

<mosaic_0001>
module attributes {stable_mosaic.version = 11 : i64} {
  func.func @kernel(%arg0: i32, %arg1: memref<1x96x32xf32, #tpu.memory_space<vmem>>, %arg2: memref<96x96xbf16, #tpu.memory_space<vmem>>, %arg3: memref<32x32xbf16, #tpu.memory_space<vmem>>, %arg4: memref<96x2xf32, #tpu.memory_space<vmem>>, %arg5: memref<96x96xbf16, #tpu.memory_space<vmem>>, %arg6: memref<32x32xbf16, #tpu.memory_space<vmem>>, %arg7: memref<96x2xf32, #tpu.memory_space<vmem>>, %arg8: memref<48x96xbf16, #tpu.memory_space<vmem>>, %arg9: memref<32x16xbf16, #tpu.memory_space<vmem>>, %arg10: memref<48x2xf32, #tpu.memory_space<vmem>>, %arg11: memref<48x96xbf16, #tpu.memory_space<vmem>>, %arg12: memref<32x16xbf16, #tpu.memory_space<vmem>>, %arg13: memref<48x2xf32, #tpu.memory_space<vmem>>, %arg14: memref<1x96x32xf32, #tpu.memory_space<vmem>>, %arg15: memref<1x96x32xf32, #tpu.memory_space<vmem>>, %arg16: memref<1x48x16xf32, #tpu.memory_space<vmem>>, %arg17: memref<1x48x16xf32, #tpu.memory_space<vmem>>) attributes {dimension_semantics = [#tpu.dimension_semantics<parallel>], iteration_bounds = array<i64: 2>, scalar_prefetch = 0 : i64, scratch_operands = 0 : i64, tpu.core_type = #tpu.core_type<tc>, window_params = [{transform_indices = @transform_0, window_bounds = array<i64: 1, 96, 32>}, {pipeline_mode = #tpu.pipeline_mode<synchronous>, transform_indices = @transform_1, window_bounds = array<i64: 96, 96>}, {pipeline_mode = #tpu.pipeline_mode<synchronous>, transform_indices = @transform_2, window_bounds = array<i64: 32, 32>}, {pipeline_mode = #tpu.pipeline_mode<synchronous>, transform_indices = @transform_3, window_bounds = array<i64: 96, 2>}, {pipeline_mode = #tpu.pipeline_mode<synchronous>, transform_indices = @transform_4, window_bounds = array<i64: 96, 96>}, {pipeline_mode = #tpu.pipeline_mode<synchronous>, transform_indices = @transform_5, window_bounds = array<i64: 32, 32>}, {pipeline_mode = #tpu.pipeline_mode<synchronous>, transform_indices = @transform_6, window_bounds = array<i64: 96, 2>}, {pipeline_mode = #tpu.pipeline_mode<synchronous>, transform_indices = @transform_7, window_bounds = array<i64: 48, 96>}, {pipeline_mode = #tpu.pipeline_mode<synchronous>, transform_indices = @transform_8, window_bounds = array<i64: 32, 16>}, {pipeline_mode = #tpu.pipeline_mode<synchronous>, transform_indices = @transform_9, window_bounds = array<i64: 48, 2>}, {pipeline_mode = #tpu.pipeline_mode<synchronous>, transform_indices = @transform_10, window_bounds = array<i64: 48, 96>}, {pipeline_mode = #tpu.pipeline_mode<synchronous>, transform_indices = @transform_11, window_bounds = array<i64: 32, 16>}, {pipeline_mode = #tpu.pipeline_mode<synchronous>, transform_indices = @transform_12, window_bounds = array<i64: 48, 2>}, {transform_indices = @transform_13, window_bounds = array<i64: 1, 96, 32>}, {transform_indices = @transform_14, window_bounds = array<i64: 1, 96, 32>}, {transform_indices = @transform_15, window_bounds = array<i64: 1, 48, 16>}, {transform_indices = @transform_16, window_bounds = array<i64: 1, 48, 16>}]} {
    %c0 = arith.constant 0 : index
    %c0_0 = arith.constant 0 : index
    %c0_1 = arith.constant 0 : index
    %0 = vector.load %arg1[%c0, %c0_0, %c0_1] : memref<1x96x32xf32, #tpu.memory_space<vmem>>, vector<1x96x32xf32>
    %1 = vector.shape_cast %0 : vector<1x96x32xf32> to vector<96x32xf32>
    %2 = arith.truncf %1 : vector<96x32xf32> to vector<96x32xbf16>
    %c0_2 = arith.constant 0 : index
    %c0_3 = arith.constant 0 : index
    %3 = vector.load %arg2[%c0_2, %c0_3] : memref<96x96xbf16, #tpu.memory_space<vmem>>, vector<96x96xbf16>
    %c0_4 = arith.constant 0 : index
    %c0_5 = arith.constant 0 : index
    %4 = vector.load %arg3[%c0_4, %c0_5] : memref<32x32xbf16, #tpu.memory_space<vmem>>, vector<32x32xbf16>
    %c0_6 = arith.constant 0 : index
    %c0_7 = arith.constant 0 : index
    %5 = vector.load %arg4[%c0_6, %c0_7] : memref<96x2xf32, #tpu.memory_space<vmem>>, vector<96x2xf32>
    %cst = arith.constant dense<0.000000e+00> : vector<96x32xf32>
    %6 = tpu.matmul %3, %2, %cst {dimension_numbers = #tpu.dot_dimension_numbers<[1], [0], [0], [1], [0, 0, 1, 1], [], []>} : vector<96x96xbf16>, vector<96x32xbf16>, vector<96x32xf32> -> vector<96x32xf32>
    %7 = arith.truncf %6 : vector<96x32xf32> to vector<96x32xbf16>
    %cst_8 = arith.constant dense<0.000000e+00> : vector<96x32xf32>
    %8 = tpu.matmul %7, %4, %cst_8 {dimension_numbers = #tpu.dot_dimension_numbers<[1], [0], [0], [1], [0, 0, 1, 1], [], []>} : vector<96x32xbf16>, vector<32x32xbf16>, vector<96x32xf32> -> vector<96x32xf32>
    %cst_9 = arith.constant 0.000000e+00 : f32
    %cst_10 = arith.constant 1.000000e+00 : f32
    %9 = vector.broadcast %cst_9 : f32 to vector<96x32xf32>
    %10 = arith.maximumf %9, %8 : vector<96x32xf32>
    %11 = vector.broadcast %cst_10 : f32 to vector<96x32xf32>
    %12 = arith.minimumf %11, %10 : vector<96x32xf32>
    %13 = vector.extract_strided_slice %5 {offsets = [0, 0], sizes = [96, 1], strides = [1, 1]} : vector<96x2xf32> to vector<96x1xf32>
    %14 = vector.broadcast %13 : vector<96x1xf32> to vector<96x32xf32>
    %15 = arith.subf %12, %14 : vector<96x32xf32>
    %16 = vector.extract_strided_slice %5 {offsets = [0, 1], sizes = [96, 1], strides = [1, 1]} : vector<96x2xf32> to vector<96x1xf32>
    %17 = vector.broadcast %16 : vector<96x1xf32> to vector<96x32xf32>
    %18 = arith.mulf %15, %17 : vector<96x32xf32>
    %c0_11 = arith.constant 0 : index
    %c0_12 = arith.constant 0 : index
    %c0_13 = arith.constant 0 : index
    %19 = vector.load %arg14[%c0_11, %c0_12, %c0_13] : memref<1x96x32xf32, #tpu.memory_space<vmem>>, vector<1x96x32xf32>
    %20 = vector.shape_cast %19 : vector<1x96x32xf32> to vector<96x32xf32>
    %21 = vector.shape_cast %18 : vector<96x32xf32> to vector<1x96x32xf32>
    tpu.vector_store %arg14[%c0_11, %c0_12, %c0_13], %21 {strides = array<i32>} : memref<1x96x32xf32, #tpu.memory_space<vmem>>, vector<1x96x32xf32>,
    %c0_14 = arith.constant 0 : index
    %c0_15 = arith.constant 0 : index
    %22 = vector.load %arg5[%c0_14, %c0_15] : memref<96x96xbf16, #tpu.memory_space<vmem>>, vector<96x96xbf16>
    %c0_16 = arith.constant 0 : index
    %c0_17 = arith.constant 0 : index
    %23 = vector.load %arg6[%c0_16, %c0_17] : memref<32x32xbf16, #tpu.memory_space<vmem>>, vector<32x32xbf16>
    %c0_18 = arith.constant 0 : index
    %c0_19 = arith.constant 0 : index
    %24 = vector.load %arg7[%c0_18, %c0_19] : memref<96x2xf32, #tpu.memory_space<vmem>>, vector<96x2xf32>
    %cst_20 = arith.constant dense<0.000000e+00> : vector<96x32xf32>
    %25 = tpu.matmul %22, %2, %cst_20 {dimension_numbers = #tpu.dot_dimension_numbers<[1], [0], [0], [1], [0, 0, 1, 1], [], []>} : vector<96x96xbf16>, vector<96x32xbf16>, vector<96x32xf32> -> vector<96x32xf32>
    %26 = arith.truncf %25 : vector<96x32xf32> to vector<96x32xbf16>
    %cst_21 = arith.constant dense<0.000000e+00> : vector<96x32xf32>
    %27 = tpu.matmul %26, %23, %cst_21 {dimension_numbers = #tpu.dot_dimension_numbers<[1], [0], [0], [1], [0, 0, 1, 1], [], []>} : vector<96x32xbf16>, vector<32x32xbf16>, vector<96x32xf32> -> vector<96x32xf32>
    %cst_22 = arith.constant 0.000000e+00 : f32
    %cst_23 = arith.constant 1.000000e+00 : f32
    %28 = vector.broadcast %cst_22 : f32 to vector<96x32xf32>
    %29 = arith.maximumf %28, %27 : vector<96x32xf32>
    %30 = vector.broadcast %cst_23 : f32 to vector<96x32xf32>
    %31 = arith.minimumf %30, %29 : vector<96x32xf32>
    %cst_24 = arith.constant 0.501960814 : f32
    %32 = vector.broadcast %cst_24 : f32 to vector<96x32xf32>
    %33 = arith.cmpf ogt, %31, %32 : vector<96x32xf32>
    %cst_25 = arith.constant 1.000000e+00 : f32
    %34 = vector.broadcast %cst_25 : f32 to vector<96x32xf32>
    %35 = arith.subf %34, %31 : vector<96x32xf32>
    %36 = arith.select %33, %35, %31 : vector<96x32xi1>, vector<96x32xf32>
    %37 = vector.extract_strided_slice %24 {offsets = [0, 0], sizes = [96, 1], strides = [1, 1]} : vector<96x2xf32> to vector<96x1xf32>
    %38 = vector.broadcast %37 : vector<96x1xf32> to vector<96x32xf32>
    %39 = arith.subf %36, %38 : vector<96x32xf32>
    %40 = vector.extract_strided_slice %24 {offsets = [0, 1], sizes = [96, 1], strides = [1, 1]} : vector<96x2xf32> to vector<96x1xf32>
    %41 = vector.broadcast %40 : vector<96x1xf32> to vector<96x32xf32>
    %42 = arith.mulf %39, %41 : vector<96x32xf32>
    %c0_26 = arith.constant 0 : index
    %c0_27 = arith.constant 0 : index
    %c0_28 = arith.constant 0 : index
    %43 = vector.load %arg15[%c0_26, %c0_27, %c0_28] : memref<1x96x32xf32, #tpu.memory_space<vmem>>, vector<1x96x32xf32>
    %44 = vector.shape_cast %43 : vector<1x96x32xf32> to vector<96x32xf32>
    %45 = vector.shape_cast %42 : vector<96x32xf32> to vector<1x96x32xf32>
    tpu.vector_store %arg15[%c0_26, %c0_27, %c0_28], %45 {strides = array<i32>} : memref<1x96x32xf32, #tpu.memory_space<vmem>>, vector<1x96x32xf32>,
    %c0_29 = arith.constant 0 : index
    %c0_30 = arith.constant 0 : index
    %46 = vector.load %arg8[%c0_29, %c0_30] : memref<48x96xbf16, #tpu.memory_space<vmem>>, vector<48x96xbf16>
    %c0_31 = arith.constant 0 : index
    %c0_32 = arith.constant 0 : index
    %47 = vector.load %arg9[%c0_31, %c0_32] : memref<32x16xbf16, #tpu.memory_space<vmem>>, vector<32x16xbf16>
    %c0_33 = arith.constant 0 : index
    %c0_34 = arith.constant 0 : index
    %48 = vector.load %arg10[%c0_33, %c0_34] : memref<48x2xf32, #tpu.memory_space<vmem>>, vector<48x2xf32>
    %cst_35 = arith.constant dense<0.000000e+00> : vector<48x32xf32>
    %49 = tpu.matmul %46, %2, %cst_35 {dimension_numbers = #tpu.dot_dimension_numbers<[1], [0], [0], [1], [0, 0, 1, 1], [], []>} : vector<48x96xbf16>, vector<96x32xbf16>, vector<48x32xf32> -> vector<48x32xf32>
    %50 = arith.truncf %49 : vector<48x32xf32> to vector<48x32xbf16>
    %cst_36 = arith.constant dense<0.000000e+00> : vector<48x16xf32>
    %51 = tpu.matmul %50, %47, %cst_36 {dimension_numbers = #tpu.dot_dimension_numbers<[1], [0], [0], [1], [0, 0, 1, 1], [], []>} : vector<48x32xbf16>, vector<32x16xbf16>, vector<48x16xf32> -> vector<48x16xf32>
    %cst_37 = arith.constant 0.000000e+00 : f32
    %cst_38 = arith.constant 1.000000e+00 : f32
    %52 = vector.broadcast %cst_37 : f32 to vector<48x16xf32>
    %53 = arith.maximumf %52, %51 : vector<48x16xf32>
    %54 = vector.broadcast %cst_38 : f32 to vector<48x16xf32>
    %55 = arith.minimumf %54, %53 : vector<48x16xf32>
    %56 = vector.extract_strided_slice %48 {offsets = [0, 0], sizes = [48, 1], strides = [1, 1]} : vector<48x2xf32> to vector<48x1xf32>
    %57 = vector.broadcast %56 : vector<48x1xf32> to vector<48x16xf32>
    %58 = arith.subf %55, %57 : vector<48x16xf32>
    %59 = vector.extract_strided_slice %48 {offsets = [0, 1], sizes = [48, 1], strides = [1, 1]} : vector<48x2xf32> to vector<48x1xf32>
    %60 = vector.broadcast %59 : vector<48x1xf32> to vector<48x16xf32>
    %61 = arith.mulf %58, %60 : vector<48x16xf32>
    %c0_39 = arith.constant 0 : index
    %c0_40 = arith.constant 0 : index
    %c0_41 = arith.constant 0 : index
    %62 = vector.load %arg16[%c0_39, %c0_40, %c0_41] : memref<1x48x16xf32, #tpu.memory_space<vmem>>, vector<1x48x16xf32>
    %63 = vector.shape_cast %62 : vector<1x48x16xf32> to vector<48x16xf32>
    %64 = vector.shape_cast %61 : vector<48x16xf32> to vector<1x48x16xf32>
    tpu.vector_store %arg16[%c0_39, %c0_40, %c0_41], %64 {strides = array<i32>} : memref<1x48x16xf32, #tpu.memory_space<vmem>>, vector<1x48x16xf32>,
    %c0_42 = arith.constant 0 : index
    %c0_43 = arith.constant 0 : index
    %65 = vector.load %arg11[%c0_42, %c0_43] : memref<48x96xbf16, #tpu.memory_space<vmem>>, vector<48x96xbf16>
    %c0_44 = arith.constant 0 : index
    %c0_45 = arith.constant 0 : index
    %66 = vector.load %arg12[%c0_44, %c0_45] : memref<32x16xbf16, #tpu.memory_space<vmem>>, vector<32x16xbf16>
    %c0_46 = arith.constant 0 : index
    %c0_47 = arith.constant 0 : index
    %67 = vector.load %arg13[%c0_46, %c0_47] : memref<48x2xf32, #tpu.memory_space<vmem>>, vector<48x2xf32>
    %cst_48 = arith.constant dense<0.000000e+00> : vector<48x32xf32>
    %68 = tpu.matmul %65, %2, %cst_48 {dimension_numbers = #tpu.dot_dimension_numbers<[1], [0], [0], [1], [0, 0, 1, 1], [], []>} : vector<48x96xbf16>, vector<96x32xbf16>, vector<48x32xf32> -> vector<48x32xf32>
    %69 = arith.truncf %68 : vector<48x32xf32> to vector<48x32xbf16>
    %cst_49 = arith.constant dense<0.000000e+00> : vector<48x16xf32>
    %70 = tpu.matmul %69, %66, %cst_49 {dimension_numbers = #tpu.dot_dimension_numbers<[1], [0], [0], [1], [0, 0, 1, 1], [], []>} : vector<48x32xbf16>, vector<32x16xbf16>, vector<48x16xf32> -> vector<48x16xf32>
    %cst_50 = arith.constant 0.000000e+00 : f32
    %cst_51 = arith.constant 1.000000e+00 : f32
    %71 = vector.broadcast %cst_50 : f32 to vector<48x16xf32>
    %72 = arith.maximumf %71, %70 : vector<48x16xf32>
    %73 = vector.broadcast %cst_51 : f32 to vector<48x16xf32>
    %74 = arith.minimumf %73, %72 : vector<48x16xf32>
    %75 = vector.extract_strided_slice %67 {offsets = [0, 0], sizes = [48, 1], strides = [1, 1]} : vector<48x2xf32> to vector<48x1xf32>
    %76 = vector.broadcast %75 : vector<48x1xf32> to vector<48x16xf32>
    %77 = arith.subf %74, %76 : vector<48x16xf32>
    %78 = vector.extract_strided_slice %67 {offsets = [0, 1], sizes = [48, 1], strides = [1, 1]} : vector<48x2xf32> to vector<48x1xf32>
    %79 = vector.broadcast %78 : vector<48x1xf32> to vector<48x16xf32>
    %80 = arith.mulf %77, %79 : vector<48x16xf32>
    %c0_52 = arith.constant 0 : index
    %c0_53 = arith.constant 0 : index
    %c0_54 = arith.constant 0 : index
    %81 = vector.load %arg17[%c0_52, %c0_53, %c0_54] : memref<1x48x16xf32, #tpu.memory_space<vmem>>, vector<1x48x16xf32>
    %82 = vector.shape_cast %81 : vector<1x48x16xf32> to vector<48x16xf32>
    %83 = vector.shape_cast %80 : vector<48x16xf32> to vector<1x48x16xf32>
    tpu.vector_store %arg17[%c0_52, %c0_53, %c0_54], %83 {strides = array<i32>} : memref<1x48x16xf32, #tpu.memory_space<vmem>>, vector<1x48x16xf32>,
    return
  }
  func.func @transform_0(%arg0: i32) -> (i32, i32, i32) {
    %c0_i32 = arith.constant 0 : i32
    %c0_i32_0 = arith.constant 0 : i32
    %c0_i32_1 = arith.constant 0 : i32
    return %arg0, %c0_i32, %c0_i32_0 : i32, i32, i32
  }
  func.func @transform_1(%arg0: i32) -> (i32, i32) {
    %c0_i32 = arith.constant 0 : i32
    %c0_i32_0 = arith.constant 0 : i32
    %c0_i32_1 = arith.constant 0 : i32
    return %c0_i32, %c0_i32_0 : i32, i32
  }
  func.func @transform_2(%arg0: i32) -> (i32, i32) {
    %c0_i32 = arith.constant 0 : i32
    %c0_i32_0 = arith.constant 0 : i32
    %c0_i32_1 = arith.constant 0 : i32
    return %c0_i32, %c0_i32_0 : i32, i32
  }
  func.func @transform_3(%arg0: i32) -> (i32, i32) {
    %c0_i32 = arith.constant 0 : i32
    %c0_i32_0 = arith.constant 0 : i32
    %c0_i32_1 = arith.constant 0 : i32
    return %c0_i32, %c0_i32_0 : i32, i32
  }
  func.func @transform_4(%arg0: i32) -> (i32, i32) {
    %c0_i32 = arith.constant 0 : i32
    %c0_i32_0 = arith.constant 0 : i32
    %c0_i32_1 = arith.constant 0 : i32
    return %c0_i32, %c0_i32_0 : i32, i32
  }
  func.func @transform_5(%arg0: i32) -> (i32, i32) {
    %c0_i32 = arith.constant 0 : i32
    %c0_i32_0 = arith.constant 0 : i32
    %c0_i32_1 = arith.constant 0 : i32
    return %c0_i32, %c0_i32_0 : i32, i32
  }
  func.func @transform_6(%arg0: i32) -> (i32, i32) {
    %c0_i32 = arith.constant 0 : i32
    %c0_i32_0 = arith.constant 0 : i32
    %c0_i32_1 = arith.constant 0 : i32
    return %c0_i32, %c0_i32_0 : i32, i32
  }
  func.func @transform_7(%arg0: i32) -> (i32, i32) {
    %c0_i32 = arith.constant 0 : i32
    %c0_i32_0 = arith.constant 0 : i32
    %c0_i32_1 = arith.constant 0 : i32
    return %c0_i32, %c0_i32_0 : i32, i32
  }
  func.func @transform_8(%arg0: i32) -> (i32, i32) {
    %c0_i32 = arith.constant 0 : i32
    %c0_i32_0 = arith.constant 0 : i32
    %c0_i32_1 = arith.constant 0 : i32
    return %c0_i32, %c0_i32_0 : i32, i32
  }
  func.func @transform_9(%arg0: i32) -> (i32, i32) {
    %c0_i32 = arith.constant 0 : i32
    %c0_i32_0 = arith.constant 0 : i32
    %c0_i32_1 = arith.constant 0 : i32
    return %c0_i32, %c0_i32_0 : i32, i32
  }
  func.func @transform_10(%arg0: i32) -> (i32, i32) {
    %c0_i32 = arith.constant 0 : i32
    %c0_i32_0 = arith.constant 0 : i32
    %c0_i32_1 = arith.constant 0 : i32
    return %c0_i32, %c0_i32_0 : i32, i32
  }
  func.func @transform_11(%arg0: i32) -> (i32, i32) {
    %c0_i32 = arith.constant 0 : i32
    %c0_i32_0 = arith.constant 0 : i32
    %c0_i32_1 = arith.constant 0 : i32
    return %c0_i32, %c0_i32_0 : i32, i32
  }
  func.func @transform_12(%arg0: i32) -> (i32, i32) {
    %c0_i32 = arith.constant 0 : i32
    %c0_i32_0 = arith.constant 0 : i32
    %c0_i32_1 = arith.constant 0 : i32
    return %c0_i32, %c0_i32_0 : i32, i32
  }
  func.func @transform_13(%arg0: i32) -> (i32, i32, i32) {
    %c0_i32 = arith.constant 0 : i32
    %c0_i32_0 = arith.constant 0 : i32
    %c0_i32_1 = arith.constant 0 : i32
    return %arg0, %c0_i32, %c0_i32_0 : i32, i32, i32
  }
  func.func @transform_14(%arg0: i32) -> (i32, i32, i32) {
    %c0_i32 = arith.constant 0 : i32
    %c0_i32_0 = arith.constant 0 : i32
    %c0_i32_1 = arith.constant 0 : i32
    return %arg0, %c0_i32, %c0_i32_0 : i32, i32, i32
  }
  func.func @transform_15(%arg0: i32) -> (i32, i32, i32) {
    %c0_i32 = arith.constant 0 : i32
    %c0_i32_0 = arith.constant 0 : i32
    %c0_i32_1 = arith.constant 0 : i32
    return %arg0, %c0_i32, %c0_i32_0 : i32, i32, i32
  }
  func.func @transform_16(%arg0: i32) -> (i32, i32, i32) {
    %c0_i32 = arith.constant 0 : i32
    %c0_i32_0 = arith.constant 0 : i32
    %c0_i32_1 = arith.constant 0 : i32
    return %arg0, %c0_i32, %c0_i32_0 : i32, i32, i32
  }
}

</mosaic_0001>

<bundles_post_ra>
// kernel: tpu_custom_call.1
= control target key start
LH: loop header
LB: loop body
LE: loop exit
PB: predicated region body
PF: predicated region fallthrough
CT: control target
= control target key end

     0   :  { %s2630_s21 = smov 0   ;;  %s3232_s0 = inlined_call_operand.vmem [shape: f32[2,96,32], index: 0, kind: input, shape index: {}]   ;;  %s3233_s1 = inlined_call_operand.vmem [shape: bf16[96,96], index: 1, kind: input, shape index: {}]   ;;  %s3234_s2 = inlined_call_operand.vmem [shape: bf16[32,32], index: 2, kind: input, shape index: {}]   ;;  %s3235_s3 = inlined_call_operand.vmem [shape: f32[96,2], index: 3, kind: input, shape index: {}]   ;;  %s3236_s4 = inlined_call_operand.vmem [shape: bf16[96,96], index: 4, kind: input, shape index: {}]   ;;  %s3237_s5 = inlined_call_operand.vmem [shape: bf16[32,32], index: 5, kind: input, shape index: {}]   ;;  %s3238_s6 = inlined_call_operand.vmem [shape: f32[96,2], index: 6, kind: input, shape index: {}]   ;;  %s3239_s7 = inlined_call_operand.vmem [shape: bf16[48,96], index: 7, kind: input, shape index: {}]   ;;  %s3240_s8 = inlined_call_operand.vmem [shape: bf16[32,16], index: 8, kind: input, shape index: {}]   ;;  %s3241_s9 = inlined_call_operand.vmem [shape: f32[48,2], index: 9, kind: input, shape index: {}]   ;;  %s3242_s10 = inlined_call_operand.vmem [shape: bf16[48,96], index: 10, kind: input, shape index: {}]   ;;  %s3243_s11 = inlined_call_operand.vmem [shape: bf16[32,16], index: 11, kind: input, shape index: {}]   ;;  %s3244_s12 = inlined_call_operand.vmem [shape: f32[48,2], index: 12, kind: input, shape index: {}]   ;;  %s3245_s13 = inlined_call_operand.vmem [shape: f32[2,96,32], index: 13, kind: output, shape index: {0}]   ;;  %s3246_s14 = inlined_call_operand.vmem [shape: f32[2,96,32], index: 14, kind: output, shape index: {1}]   ;;  %s3247_s15 = inlined_call_operand.vmem [shape: f32[2,48,16], index: 15, kind: output, shape index: {2}]   ;;  %s3248_s16 = inlined_call_operand.vmem [shape: f32[2,48,16], index: 16, kind: output, shape index: {3}]  }
   0x1   :  { %3249 = sst [smem:[#allocation2_spill]] %s3232_s0 }
   0x2 LB: > { %s2179_s22 = sadd.s32 4294967295, %s2539_s21   ;;  %p2183_p0 = scmp.ge.s32.totalorder %s2539_s21, 1  ;;  %s2539_s21 = sphi %s2630_s21, %s27_s21  }
   0x3   : > { %p469_p1 = scmp.lt.s32.totalorder %s2539_s21, 3 }
   0x5   : > { %p470_p2 = pnand %p2183_p0, %p469_p1 }
   0x6   : > { %p534_p3 = scmp.lt.s32.totalorder (!%p470_p2), %s2179_s22, 1  ;;  %v2507_v0 = vld [vmem:[%s3233_s1] sm:$0xff] (!%p470_p2)   ;;  %vm636_vm0 = vcmask (!%p470_p2), 785408   ;;  %s3250_s28 = sld [smem:[#allocation2_spill]] (!%p470_p2)  ;;  %v2508_v20 = vld [vmem:[%s3233_s1 + $0x8] sm:$0xff] (!%p470_p2)   ;;  %v2509_v21 = vld [vmem:[%s3233_s1 + $0x10] sm:$0xff] (!%p470_p2)  }
   0x7   : > { %473 = sbr.rel (%p470_p2) target bundleno = 790 (0x316), region = 72  ;;  %2333 = vmatprep.mubr.msk.bf16.mxu0 (!%p470_p2), %vm636_vm0, %v2507_v0  ;;  %v2513_v1 = vld [vmem:[%s3234_s2] sm:$0xff] (!%p470_p2)   ;;  %v2510_v22 = vld [vmem:[%s3233_s1 + $0x18] sm:$0xff] (!%p470_p2)   ;;  %v2512_v24 = vld [vmem:[%s3233_s1 + $0x28] sm:$0xff] (!%p470_p2)   ;;  %v2541_v27 = vmov (!%p470_p2), 0   ;;  %v2542_v48 = vmov (!%p470_p2), 1  }
   0x8   : > { %2345 = vmatprep.subr.bf16.mxu1 (!%p470_p2), %v2513_v1  ;;  %v2511_v23 = vld [vmem:[%s3233_s1 + $0x20] sm:$0xff] (!%p470_p2)   ;;  %v2514_v25 = vld [vmem:[%s3234_s2 + $0x8] sm:$0xff] (!%p470_p2)   ;;  %2499 = vset.pattern.permute.xlu0 (!%p470_p2), %v2541_v27  ;;  %v600_v30 = vld [vmem:[%s3235_s3 + $0x30] sm:$0xff] (!%p470_p2)  ;;  %vm754_vm1 = vcmask (!%p470_p2), 261120   ;;  %vm2544_vm2 = vmmov (!%p470_p2), 0   ;;  %vm1756_vm15 = vcmask (!%p470_p2), 130048  }
   0x9   : > { %2346 = vmatpush3.bf16.msra.mxu1 (!%p470_p2), %v2513_v1  ;;  %v594_v26 = vld [vmem:[%s3235_s3] sm:$0xff] (!%p470_p2)  ;;  %2500 = vset.pattern.permute.xlu1 (!%p470_p2), %v2541_v27  ;;  %v595_v28 = vld [vmem:[%s3235_s3 + $0x8] sm:$0xff] (!%p470_p2)  ;;  %v604_v32 = vld [vmem:[%s3235_s3 + $0x50] sm:$0xff] (!%p470_p2) }
   0xa   : > { %2347 = vmatprep.subr.bf16.mxu1 (!%p470_p2), %v2514_v25  ;;  %880 = vperm.xlu0 (!%p470_p2), %2499, %v594_v26   ;;  %v598_v29 = vld [vmem:[%s3235_s3 + $0x20] sm:$0xff] (!%p470_p2)  ;;  %v2725_v33 = vld [vmem:[%s3238_s6 + $0x8] sm:$0xff] (!%p470_p2)  ;;  %v2737_v35 = vld [vmem:[%s3238_s6 + $0x30] sm:$0xff] (!%p470_p2) }
   0xb   : > { %v602_v31 = vld [vmem:[%s3235_s3 + $0x40] sm:$0xff] (!%p470_p2)  ;;  %v596_v36 = vld [vmem:[%s3235_s3 + $0x10] sm:$0xff] (!%p470_p2)  ;;  %v597_v38 = vld [vmem:[%s3235_s3 + $0x18] sm:$0xff] (!%p470_p2) }
   0xc   : > { %v2731_v34 = vld [vmem:[%s3238_s6 + $0x20] sm:$0xff] (!%p470_p2)  ;;  %890 = vperm.xlu1 (!%p470_p2), %2500, %v596_v36   ;;  %v2755_v39 = vld [vmem:[%s3238_s6 + $0x50] sm:$0xff] (!%p470_p2)  ;;  %v599_v40 = vld [vmem:[%s3235_s3 + $0x28] sm:$0xff] (!%p470_p2) }
   0xd   : > { %2348 = vmatpush3.bf16.msra.mxu1 (!%p470_p2), %v2514_v25  ;;  %v2746_v37 = vld [vmem:[%s3238_s6 + $0x40] sm:$0xff] (!%p470_p2)  ;;  %v2764_v41 = vld [vmem:[%s3241_s9 + $0x8] sm:$0xff] (!%p470_p2)  ;;  %v601_v42 = vld [vmem:[%s3235_s3 + $0x38] sm:$0xff] (!%p470_p2) }
   0xe   : > { %s3252_s22 = smov (!%p534_p3, %s2179_s22), 1  ;;  %885 = vperm.xlu0 %2499, %v595_v28   ;;  %v2773_v43 = vld [vmem:[%s3241_s9 + $0x20] sm:$0xff]  ;;  %v603_v44 = vld [vmem:[%s3235_s3 + $0x48] sm:$0xff]  ;;  %v2782_v45 = vld [vmem:[%s3244_s12 + $0x10] sm:$0xff] }
   0xf   : > { %s2645_s25 = smul.u32 96, %s3252_s22  ;;  %v605_v46 = vld [vmem:[%s3235_s3 + $0x58] sm:$0xff]  ;;  %v2791_v47 = vld [vmem:[%s3244_s12 + $0x28] sm:$0xff] }
  0x10   : > { %895 = vperm.xlu1 %2500, %v597_v38   ;;  %v1041_v25 = vld [vmem:[%s3238_s6 + $0x18] sm:$0xff] }
  0x11   : > { %s538_s29 = scalar_lea.vmem %s3250_s28, %s2645_s25  ;;  %s3024_s30 = scalar_lea.vmem %s3245_s13, %s2645_s25 }
  0x12   : > { %v560_v2 = vld [vmem:[%s538_s29] sm:$0xff]  ;;  %v561_v3 = vld [vmem:[%s538_s29 + $0x8] sm:$0xff]  ;;  %v562_v4 = vld [vmem:[%s538_s29 + $0x10] sm:$0xff]  ;;  %900 = vperm.xlu0 %2499, %v598_v29   ;;  %s3130_s24 = scalar_lea.vmem %s3246_s14, %s2645_s25  ;;  %s2486_s25 = smul.u32 48, %s3252_s22 }
  0x13   : > { %v2654_v5 = vpack.c.bf16 %v561_v3, %v560_v2  ;;  %v563_v6 = vld [vmem:[%s538_s29 + $0x18] sm:$0xff]  ;;  %v564_v8 = vld [vmem:[%s538_s29 + $0x20] sm:$0xff]  ;;  %v565_v9 = vld [vmem:[%s538_s29 + $0x28] sm:$0xff] }
  0x14   : > { %v2656_v7 = vpack.c.bf16 %v563_v6, %v562_v4  ;;  %v566_v10 = vld [vmem:[%s538_s29 + $0x30] sm:$0xff]  ;;  %v567_v11 = vld [vmem:[%s538_s29 + $0x38] sm:$0xff]  ;;  %v2661_v12 = vpack.c.bf16 %v565_v9, %v564_v8  ;;  %v568_v13 = vld [vmem:[%s538_s29 + $0x40] sm:$0xff]  ;;  %905 = vperm.xlu1 %2500, %v599_v40   ;;  %v2543_v8 = vmov 0.0   ;;  %s3183_s28 = scalar_lea.vmem %s3247_s15, %s2486_s25  ;;  %s3210_s0 = scalar_lea.vmem %s3248_s16, %s2486_s25 }
  0x15   : > { %2321 = vmatprep.subr.bf16.mxu0 %v2654_v5  ;;  %v569_v14 = vld [vmem:[%s538_s29 + $0x48] sm:$0xff]  ;;  %v2665_v15 = vpack.c.bf16 %v567_v11, %v566_v10  ;;  %v570_v16 = vld [vmem:[%s538_s29 + $0x50] sm:$0xff]  ;;  %v571_v17 = vld [vmem:[%s538_s29 + $0x58] sm:$0xff]  ;;  %2361 = vmatprep.subr.bf16.mxu1 %v2654_v5 }
  0x16   : > { %2322 = vmatpush3.bf16.msra.mxu0 %v2654_v5  ;;  %v2669_v18 = vpack.c.bf16 %v569_v14, %v568_v13  ;;  %v2673_v19 = vpack.c.bf16 %v571_v17, %v570_v16  ;;  %910 = vperm.xlu0 %2499, %v600_v30   ;;  %v2515_v3 = vld [vmem:[%s3236_s4] sm:$0xff]   ;;  %v2516_v4 = vld [vmem:[%s3236_s4 + $0x8] sm:$0xff]   ;;  %v2517_v6 = vld [vmem:[%s3236_s4 + $0x10] sm:$0xff]  }
  0x17   : > { %2323 = vmatprep.subr.bf16.mxu0 %v2656_v7  ;;  %v2518_v9 = vld [vmem:[%s3236_s4 + $0x18] sm:$0xff]   ;;  %v2519_v10 = vld [vmem:[%s3236_s4 + $0x20] sm:$0xff]   ;;  %v2520_v11 = vld [vmem:[%s3236_s4 + $0x28] sm:$0xff]  }
  0x18   : > { %915 = vperm.xlu1 %2500, %v601_v42   ;;  %v2521_v13 = vld [vmem:[%s3239_s7] sm:$0xff]   ;;  %v2522_v14 = vld [vmem:[%s3239_s7 + $0x8] sm:$0xff]  }
  0x19   : > { %v2527_v16 = vld [vmem:[%s3237_s5] sm:$0xff]   ;;  %v2528_v17 = vld [vmem:[%s3237_s5 + $0x8] sm:$0xff]  }
  0x1a   : > { %2324 = vmatpush3.bf16.msra.mxu0 %v2656_v7  ;;  %920 = vperm.xlu0 %2499, %v602_v31  }
  0x1b   : > { %2325 = vmatprep.subr.bf16.mxu0 %v2661_v12 }
  0x1c   : > { %925 = vperm.xlu1 %2500, %v603_v44  }
  0x1e   : > { %2326 = vmatpush3.bf16.msra.mxu0 %v2661_v12  ;;  %930 = vperm.xlu0 %2499, %v604_v32  }
  0x1f   : > { %2327 = vmatprep.subr.bf16.mxu0 %v2665_v15 }
  0x20   : > { %935 = vperm.xlu1 %2500, %v605_v46  }
  0x22   : > { %2328 = vmatpush3.bf16.msra.mxu0 %v2665_v15  ;;  %1363 = vperm.xlu0 %2499, %v2725_v33  }
  0x23   : > { %2329 = vmatprep.subr.bf16.mxu0 %v2669_v18 }
  0x24   : > { %2501 = vset.pattern.permute.xlu1 %v2542_v48 }
  0x25   : > { %955 = vperm.xlu1 %2501, %v595_v28   ;;  %v1043_v28 = vld [vmem:[%s3238_s6 + $0x28] sm:$0xff] }
  0x26   : > { %2330 = vmatpush3.bf16.msra.mxu0 %v2669_v18  ;;  %1378 = vperm.xlu0 %2499, %v2731_v34  }
  0x27   : > { %2331 = vmatprep.subr.bf16.mxu0 %v2673_v19 }
  0x29   : > { %959 = vperm.xlu1 %2501, %v596_v36  }
  0x2a   : > { %2332 = vmatpush3.bf16.msra.mxu0 %v2673_v19  ;;  %1388 = vperm.xlu0 %2499, %v2737_v35  }
  0x2b   : > { %2385 = vmatprep.subr.bf16.mxu0 %v2527_v16 }
  0x2d   : > { %2334 = vmatmul.mubr.msk.bf16.vlgmr.msra.gmra.mrb[0].mxu0 %vm636_vm0, %v2508_v20  ;;  %967 = vperm.xlu1 %2501, %v598_v29  }
  0x2e   : > { %2337 = vmatprep.mubr.msk.bf16.mxu0 %vm636_vm0, %v2509_v21  ;;  %1398 = vperm.xlu0 %2499, %v2746_v37  }
  0x2f   : > { %2386 = vmatpush3.bf16.msra.mxu0 %v2527_v16 }
  0x30   : > { %2387 = vmatprep.subr.bf16.mxu0 %v2528_v17 }
  0x31   : > { %975 = vperm.xlu1 %2501, %v600_v30   ;;  %v1045_v30 = vld [vmem:[%s3238_s6 + $0x38] sm:$0xff] }
  0x32   : > { %1408 = vperm.xlu0 %2499, %v2755_v39  }
  0x33   : > { %2388 = vmatpush3.bf16.msra.mxu0 %v2528_v17 }
  0x34   : > { %2425 = vmatprep.subr.bf16.mxu0 %v2543_v8 }
  0x35   : > { %2338 = vmatmul.mubr.msk.bf16.gmra.mrb[4].mxu0 %vm636_vm0, %v2510_v22  ;;  %983 = vperm.xlu1 %2501, %v602_v31   ;;  %v1038_v22 = vld [vmem:[%s3238_s6] sm:$0xff] }
  0x36   : > { %2341 = vmatprep.mubr.msk.bf16.mxu0 %vm636_vm0, %v2511_v23  ;;  %1697 = vperm.xlu0 %2499, %v2764_v41   ;;  %v1040_v23 = vld [vmem:[%s3238_s6 + $0x10] sm:$0xff] }
  0x39   : > { %991 = vperm.xlu1 %2501, %v604_v32   ;;  %v1047_v32 = vld [vmem:[%s3238_s6 + $0x48] sm:$0xff] }
  0x3a   : > { %1712 = vperm.xlu0 %2499, %v2773_v43  }
  0x3d   : > { %2342 = vmatmul.mubr.msk.bf16.gmra.mrb[8].mxu0 %vm636_vm0, %v2512_v24  ;;  %2502 = vset.pattern.permute.xlu1 %v2541_v27 }
  0x3e   : > { %1965 = vperm.xlu0 %2499, %v2782_v45   ;;  %1358 = vperm.xlu1 %2502, %v1038_v22  }
  0x42   : > { %1980 = vperm.xlu0 %2499, %v2791_v47   ;;  %1368 = vperm.xlu1 %2502, %v1040_v23  }
  0x46   : > { %2505 = vset.pattern.permute.xlu0 %v2542_v48  ;;  %1373 = vperm.xlu1 %2502, %v1041_v25  }
  0x47   : > { %951 = vperm.xlu0 %2505, %v594_v26   ;;  %v2930_v26 = vld [vmem:[%s3243_s11] sm:$0xff]  }
  0x4a   : > { %1383 = vperm.xlu1 %2502, %v1043_v28  }
  0x4b   : > { %963 = vperm.xlu0 %2505, %v597_v38   ;;  %v2952_v38 = vld [vmem:[%s3243_s11 + $0x8] sm:$0xff]  }
  0x4e   : > { %1393 = vperm.xlu1 %2502, %v1045_v30  }
  0x4f   : > { %971 = vperm.xlu0 %2505, %v599_v40   ;;  %v1049_v40 = vld [vmem:[%s3238_s6 + $0x58] sm:$0xff] }
  0x52   : > { %1403 = vperm.xlu1 %2502, %v1047_v32  }
  0x53   : > { %979 = vperm.xlu0 %2505, %v601_v42  }
  0x56   : > { %1413 = vperm.xlu1 %2502, %v1049_v40  }
  0x57   : > { %987 = vperm.xlu0 %2505, %v603_v44  }
  0x5a   : > { %2503 = vset.pattern.permute.xlu1 %v2542_v48 }
  0x5b   : > { %995 = vperm.xlu0 %2505, %v605_v46   ;;  %1433 = vperm.xlu1 %2503, %v2725_v33   ;;  %v1512_v33 = vld [vmem:[%s3241_s9 + $0x10] sm:$0xff] }
  0x5f   : > { %1429 = vperm.xlu0 %2505, %v1038_v22   ;;  %1437 = vperm.xlu1 %2503, %v1040_v23  }
  0x63   : > { %1441 = vperm.xlu0 %2505, %v1041_v25   ;;  %1445 = vperm.xlu1 %2503, %v2731_v34  }
  0x67   : > { %1449 = vperm.xlu0 %2505, %v1043_v28   ;;  %1453 = vperm.xlu1 %2503, %v2737_v35   ;;  %v1515_v35 = vld [vmem:[%s3241_s9 + $0x28] sm:$0xff] }
  0x6b   : > { %1457 = vperm.xlu0 %2505, %v1045_v30   ;;  %1461 = vperm.xlu1 %2503, %v2746_v37   ;;  %v1774_v37 = vld [vmem:[%s3244_s12 + $0x8] sm:$0xff] }
  0x6f   : > { %1465 = vperm.xlu0 %2505, %v1047_v32   ;;  %1469 = vperm.xlu1 %2503, %v2755_v39   ;;  %v1776_v39 = vld [vmem:[%s3244_s12 + $0x18] sm:$0xff] }
  0x73   : > { %1473 = vperm.xlu0 %2505, %v1049_v40   ;;  %2504 = vset.pattern.permute.xlu1 %v2541_v27 }
  0x8b   : > { %v891_v44 = vpop.permute.xlu1 %890 }
 0x100   : > { %v2335_v49 = vpop.f32.mrb[0].mxu0 }
 0x101   : > { %v689_v50 = vpop.f32.mrb[1].mxu0 }
 0x102   : > { %v2336_v51 = vpop.f32.mrb[2].mxu0 }
 0x103   : > { %v737_v52 = vpack.c.bf16 %v2336_v51, %v2335_v49  ;;  %v692_v53 = vpop.f32.mrb[3].mxu0  ;;  %v2965_v49 = vpop.permute.xlu1 %895  ;;  %v1510_v51 = vld [vmem:[%s3241_s9] sm:$0xff] }
 0x104   : > { %v736_v54 = vpack.c.bf16 %v692_v53, %v689_v50  ;;  %1727 = vperm.xlu0 %2505, %v1510_v51   ;;  %1692 = vperm.xlu1 %2504, %v1510_v51  }
 0x106   : > { %2349 = vmatprep.mubr.msk.bf16.mxu1 %vm754_vm1, %v736_v54 }
 0x107   : > { %2350 = vmatmul.mubr.msk.bf16.vlgmr.msra.gmra.mrb[0].mxu1 %vm754_vm1, %v737_v52  ;;  %v2973_v52 = vpop.permute.xlu1 %905 }
 0x108   : > { %2362 = vmatpush3.bf16.msra.mxu1 %v2654_v5  ;;  %v2339_v55 = vpop.f32.mrb[4].mxu0  ;;  %1735 = vperm.xlu0 %2505, %v1512_v33  }
 0x109   : > { %v705_v56 = vpop.f32.mrb[5].mxu0  ;;  %2363 = vmatprep.subr.bf16.mxu1 %v2656_v7  ;;  %1702 = vperm.xlu1 %2504, %v1512_v33  }
 0x10a   : > { %v2340_v57 = vpop.f32.mrb[6].mxu0 }
 0x10b   : > { %v739_v58 = vpack.c.bf16 %v2340_v57, %v2339_v55  ;;  %v708_v59 = vpop.f32.mrb[7].mxu0  ;;  %v2985_v53 = vpop.permute.xlu1 %915  ;;  %v1513_v57 = vld [vmem:[%s3241_s9 + $0x18] sm:$0xff] }
 0x10c   : > { %v738_v60 = vpack.c.bf16 %v708_v59, %v705_v56  ;;  %2364 = vmatpush3.bf16.msra.mxu1 %v2656_v7  ;;  %1747 = vperm.xlu0 %2505, %v1515_v35   ;;  %v3011_v59 = vld [vmem:[%s3244_s12] sm:$0xff] }
 0x10d   : > { %2365 = vmatprep.subr.bf16.mxu1 %v2661_v12  ;;  %1707 = vperm.xlu1 %2504, %v1513_v57  }
 0x10e   : > { %2353 = vmatprep.mubr.msk.bf16.mxu1 %vm754_vm1, %v738_v60 }
 0x10f   : > { %2354 = vmatmul.mubr.msk.bf16.gmra.mrb[4].mxu1 %vm754_vm1, %v739_v58  ;;  %v2993_v55 = vpop.permute.xlu1 %925 }
 0x110   : > { %2366 = vmatpush3.bf16.msra.mxu1 %v2661_v12  ;;  %v2343_v61 = vpop.f32.mrb[8].mxu0  ;;  %1994 = vperm.xlu0 %2505, %v1774_v37  }
 0x111   : > { %v721_v62 = vpop.f32.mrb[9].mxu0  ;;  %2367 = vmatprep.subr.bf16.mxu1 %v2665_v15  ;;  %1717 = vperm.xlu1 %2504, %v1515_v35  }
 0x112   : > { %v2344_v63 = vpop.f32.mrb[10].mxu0 }
 0x113   : > { %v741_v0 = vpack.c.bf16 %v2344_v63, %v2343_v61  ;;  %v724_v1 = vpop.f32.mrb[11].mxu0  ;;  %v3003_v27 = vpop.permute.xlu1 %935 }
 0x114   : > { %v740_v2 = vpack.c.bf16 %v724_v1, %v721_v62  ;;  %2368 = vmatpush3.bf16.msra.mxu1 %v2665_v15  ;;  %2002 = vperm.xlu0 %2505, %v1776_v39  }
 0x115   : > { %2369 = vmatprep.subr.bf16.mxu1 %v2669_v18  ;;  %1955 = vperm.xlu1 %2504, %v3011_v59  }
 0x116   : > { %2357 = vmatprep.mubr.msk.bf16.mxu1 %vm754_vm1, %v740_v2 }
 0x117   : > { %2358 = vmatmul.mubr.msk.bf16.gmra.mrb[8].mxu1 %vm754_vm1, %v741_v0  ;;  %v956_v60 = vpop.permute.xlu1 %955 }
 0x118   : > { %2370 = vmatpush3.bf16.msra.mxu1 %v2669_v18  ;;  %2373 = vmatprep.mubr.msk.bf16.mxu1 %vm636_vm0, %v2515_v3 }
 0x119   : > { %2371 = vmatprep.subr.bf16.mxu1 %v2673_v19  ;;  %2010 = vperm.xlu0 %2505, %v2791_v47   ;;  %v3017_v47 = vld [vmem:[%s3244_s12 + $0x20] sm:$0xff] }
 0x11a   : > { %1960 = vperm.xlu1 %2504, %v1774_v37  }
 0x11b   : > { %v960_v62 = vpop.permute.xlu1 %959 }
 0x11c   : > { %2372 = vmatpush3.bf16.msra.mxu1 %v2673_v19 }
 0x11d   : > { %2401 = vmatprep.subr.bf16.mxu1 %v2543_v8 }
 0x11e   : > { %1970 = vperm.xlu1 %2504, %v1776_v39  }
 0x11f   : > { %2374 = vmatmul.mubr.msk.bf16.vlgmr.msra.gmra.mrb[12].mxu1 %vm636_vm0, %v2516_v4 }
 0x120   : > { %2402 = vmatpush3.bf16.msra.mxu1 %v2654_v5  ;;  %2377 = vmatprep.mubr.msk.bf16.mxu1 %vm636_vm0, %v2517_v6  ;;  %v968_v6 = vpop.permute.xlu1 %967 }
 0x121   : > { %2403 = vmatprep.subr.bf16.mxu1 %v2543_v8 }
 0x122   : > { %1975 = vperm.xlu1 %2504, %v3017_v47  }
 0x124   : > { %2404 = vmatpush3.bf16.msra.mxu1 %v2656_v7  ;;  %v976_v30 = vpop.permute.xlu1 %975 }
 0x125   : > { %2405 = vmatprep.subr.bf16.mxu1 %v2543_v8 }
 0x126   : > { %2506 = vset.pattern.permute.xlu1 %v2542_v48 }
 0x127   : > { %2378 = vmatmul.mubr.msk.bf16.gmra.mrb[16].mxu1 %vm636_vm0, %v2518_v9  ;;  %1731 = vperm.xlu1 %2506, %v2764_v41  }
 0x128   : > { %2406 = vmatpush3.bf16.msra.mxu1 %v2661_v12  ;;  %2381 = vmatprep.mubr.msk.bf16.mxu1 %vm636_vm0, %v2519_v10 }
 0x129   : > { %2407 = vmatprep.subr.bf16.mxu1 %v2543_v8 }
 0x12b   : > { %1739 = vperm.xlu1 %2506, %v1513_v57  }
 0x12c   : > { %2408 = vmatpush3.bf16.msra.mxu1 %v2665_v15 }
 0x12d   : > { %2409 = vmatprep.subr.bf16.mxu1 %v2543_v8 }
 0x12f   : > { %2382 = vmatmul.mubr.msk.bf16.gmra.mrb[20].mxu1 %vm636_vm0, %v2520_v11  ;;  %1743 = vperm.xlu1 %2506, %v2773_v43  }
 0x130   : > { %2410 = vmatpush3.bf16.msra.mxu1 %v2669_v18  ;;  %2413 = vmatprep.mubr.msk.bf16.mxu1 %vm2544_vm2, %v2543_v8 }
 0x131   : > { %2411 = vmatprep.subr.bf16.mxu1 %v2543_v8 }
 0x133   : > { %1990 = vperm.xlu1 %2506, %v3011_v59  }
 0x134   : > { %2412 = vmatpush3.bf16.msra.mxu1 %v2673_v19 }
 0x135   : > { %2441 = vmatprep.subr.bf16.mxu1 %v2543_v8 }
 0x137   : > { %2414 = vmatmul.mubr.msk.bf16.vlgmr.msra.gmra.mrb[24].mxu1 %vm636_vm0, %v2521_v13  ;;  %1998 = vperm.xlu1 %2506, %v2782_v45  }
 0x138   : > { %2442 = vmatpush3.bf16.msra.mxu1 %v2654_v5  ;;  %2417 = vmatprep.mubr.msk.bf16.mxu1 %vm2544_vm2, %v2543_v8  ;;  %v2523_v5 = vld [vmem:[%s3239_s7 + $0x10] sm:$0xff]  }
 0x139   : > { %2443 = vmatprep.subr.bf16.mxu1 %v2543_v8 }
 0x13b   : > { %2006 = vperm.xlu1 %2506, %v3017_v47  }
 0x13c   : > { %2444 = vmatpush3.bf16.msra.mxu1 %v2656_v7  ;;  %v2524_v7 = vld [vmem:[%s3242_s10] sm:$0xff]  }
 0x13d   : > { %2445 = vmatprep.subr.bf16.mxu1 %v2543_v8 }
 0x13f   : > { %2418 = vmatmul.mubr.msk.bf16.gmra.mrb[28].mxu1 %vm636_vm0, %v2522_v14 }
 0x140   : > { %2446 = vmatpush3.bf16.msra.mxu1 %v2661_v12  ;;  %2421 = vmatprep.mubr.msk.bf16.mxu1 %vm2544_vm2, %v2543_v8  ;;  %v2525_v12 = vld [vmem:[%s3242_s10 + $0x8] sm:$0xff]  }
 0x141   : > { %2447 = vmatprep.subr.bf16.mxu1 %v2543_v8 }
 0x144   : > { %2448 = vmatpush3.bf16.msra.mxu1 %v2665_v15  ;;  %v2526_v15 = vld [vmem:[%s3242_s10 + $0x10] sm:$0xff]  }
 0x145   : > { %2449 = vmatprep.subr.bf16.mxu1 %v2543_v8 }
 0x147   : > { %2422 = vmatmul.mubr.msk.bf16.gmra.mrb[32].mxu1 %vm636_vm0, %v2523_v5 }
 0x148   : > { %2450 = vmatpush3.bf16.msra.mxu1 %v2669_v18  ;;  %2453 = vmatprep.mubr.msk.bf16.mxu1 %vm2544_vm2, %v2543_v8  ;;  %v2908_v18 = vpop.permute.xlu0 %880 }
 0x149   : > { %2451 = vmatprep.subr.bf16.mxu1 %v2543_v8 }
 0x14c   : > { %2452 = vmatpush3.bf16.msra.mxu1 %v2673_v19  ;;  %v2910_v19 = vpop.permute.xlu0 %885 }
 0x14d   : > { %2481 = vmatprep.subr.bf16.mxu1 %v2543_v8 }
 0x14f   : > { %2454 = vmatmul.mubr.msk.bf16.vlgmr.msra.gmra.mrb[36].mxu1 %vm636_vm0, %v2524_v7 }
 0x150   : > { %2457 = vmatprep.mubr.msk.bf16.mxu1 %vm2544_vm2, %v2543_v8  ;;  %v2912_v20 = vpop.permute.xlu0 %900  ;;  %2483 = vmatpush3.bf16.msra.mxu1 %v2930_v26 }
 0x151   : > { %2482 = vmatprep.subr.bf16.mxu1 %v2543_v8 }
 0x154   : > { %v2914_v21 = vpop.permute.xlu0 %910  ;;  %2484 = vmatpush3.bf16.msra.mxu1 %v2952_v38 }
 0x157   : > { %2458 = vmatmul.mubr.msk.bf16.gmra.mrb[40].mxu1 %vm636_vm0, %v2525_v12 }
 0x158   : > { %2461 = vmatprep.mubr.msk.bf16.mxu1 %vm2544_vm2, %v2543_v8  ;;  %v2922_v24 = vpop.permute.xlu0 %920 }
 0x15c   : > { %v2935_v29 = vpop.permute.xlu0 %930 }
 0x15f   : > { %2462 = vmatmul.mubr.msk.bf16.gmra.mrb[44].mxu1 %vm636_vm0, %v2526_v15 }
 0x160   : > { %2477 = vmatprep.mubr.msk.bf16.mxu1 %vm2544_vm2, %v2543_v8  ;;  %v2942_v31 = vpop.permute.xlu0 %1363 }
 0x164   : > { %v2947_v36 = vpop.permute.xlu0 %1378 }
 0x168   : > { %v2958_v42 = vpop.permute.xlu0 %1388 }
 0x16c   : > { %v2962_v46 = vpop.permute.xlu0 %1398 }
 0x170   : > { %v2967_v50 = vpop.permute.xlu0 %1408 }
 0x174   : > { %v2979_v34 = vpop.permute.xlu0 %1697 }
 0x178   : > { %v2987_v54 = vpop.permute.xlu0 %1712 }
 0x17c   : > { %v2998_v56 = vpop.permute.xlu0 %1965 }
 0x180   : > { %v3005_v58 = vpop.permute.xlu0 %1980 }
 0x184   : > { %v952_v61 = vpop.permute.xlu0 %951 }
 0x188   : > { %v964_v63 = vpop.permute.xlu0 %963 }
 0x18c   : > { %v972_v5 = vpop.permute.xlu0 %971 }
 0x190   : > { %v980_v33 = vpop.permute.xlu0 %979 }
 0x1da   : > { %v2351_v0 = vpop.f32.mrb[0].mxu1 }
 0x1db   : > { %v856_v1 = vmax.f32 %v2351_v0, 0.0  ;;  %v807_v2 = vpop.f32.mrb[1].mxu1 }
 0x1dc   : > { %v854_v3 = vmax.f32 %v807_v2, 0.0  ;;  %v2352_v4 = vpop.f32.mrb[2].mxu1 }
 0x1dd   : > { %v868_v9 = vmin.f32 %v856_v1, 1.0  ;;  %v857_v10 = vmax.f32 %v2352_v4, 0.0  ;;  %v810_v11 = vpop.f32.mrb[3].mxu1 }
 0x1de   : > { %v866_v13 = vmin.f32 %v854_v3, 1.0  ;;  %v855_v14 = vmax.f32 %v810_v11, 0.0 }
 0x1df   : > { %v869_v7 = vmin.f32 %v857_v10, 1.0  ;;  %v940_v12 = vsub.f32 %v868_v9, %v891_v44  ;;  %v988_v9 = vpop.permute.xlu0 %987 }
 0x1e0   : > { %v867_v15 = vmin.f32 %v855_v14, 1.0  ;;  %v938_v16 = vsub.f32 %v866_v13, %v2908_v18 }
 0x1e1   : > { %v1000_v17 = vmul.f32 %v960_v62, %v940_v12  ;;  %v941_v22 = vsub.f32 %v869_v7, %v2965_v49 }
 0x1e2   : > { %v939_v23 = vsub.f32 %v867_v15, %v2910_v19  ;;  %v998_v25 = vmul.f32 %v952_v61, %v938_v16  ;;  %v2355_v28 = vpop.f32.mrb[4].mxu1 }
 0x1e3   : > { %1012 = vst.msk [vmem:[%s3024_s30 + $0x10] sm:$0xff] %vm754_vm1, %v1000_v17  ;;  %v1001_v32 = vmul.f32 %v964_v63, %v941_v22  ;;  %v860_v40 = vmax.f32 %v2355_v28, 0.0  ;;  %v823_v44 = vpop.f32.mrb[5].mxu1  ;;  %v984_v63 = vpop.permute.xlu1 %983 }
 0x1e4   : > { %v999_v18 = vmul.f32 %v956_v60, %v939_v23  ;;  %1010 = vst.msk [vmem:[%s3024_s30] sm:$0xff] %vm754_vm1, %v998_v25  ;;  %v858_v49 = vmax.f32 %v823_v44, 0.0  ;;  %v2356_v51 = vpop.f32.mrb[6].mxu1  ;;  %v996_v17 = vpop.permute.xlu0 %995 }
 0x1e5   : > { %1013 = vst.msk [vmem:[%s3024_s30 + $0x18] sm:$0xff] %vm754_vm1, %v1001_v32  ;;  %v872_v19 = vmin.f32 %v860_v40, 1.0  ;;  %v861_v35 = vmax.f32 %v2356_v51, 0.0  ;;  %v826_v37 = vpop.f32.mrb[7].mxu1 }
 0x1e6   : > { %1011 = vst.msk [vmem:[%s3024_s30 + $0x8] sm:$0xff] %vm754_vm1, %v999_v18  ;;  %v870_v48 = vmin.f32 %v858_v49, 1.0  ;;  %v859_v39 = vmax.f32 %v826_v37, 0.0  ;;  %v2530_v18 = vld [vmem:[%s3240_s8 + $0x8] sm:$0xff]  }
 0x1e7   : > { %v873_v61 = vmin.f32 %v861_v35, 1.0  ;;  %v944_v62 = vsub.f32 %v872_v19, %v2914_v21  ;;  %v992_v12 = vpop.permute.xlu1 %991 }
 0x1e8   : > { %v942_v41 = vsub.f32 %v870_v48, %v2912_v20  ;;  %v871_v60 = vmin.f32 %v859_v39, 1.0 }
 0x1e9   : > { %v1004_v0 = vmul.f32 %v976_v30, %v944_v62  ;;  %v945_v1 = vsub.f32 %v873_v61, %v2985_v53 }
 0x1ea   : > { %v1002_v2 = vmul.f32 %v968_v6, %v942_v41  ;;  %v943_v3 = vsub.f32 %v871_v60, %v2973_v52  ;;  %v2359_v4 = vpop.f32.mrb[8].mxu1 }
 0x1eb   : > { %1016 = vst.msk [vmem:[%s3024_s30 + $0x30] sm:$0xff] %vm754_vm1, %v1004_v0  ;;  %v1005_v10 = vmul.f32 %v980_v33, %v945_v1  ;;  %v864_v21 = vmax.f32 %v2359_v4, 0.0  ;;  %v839_v11 = vpop.f32.mrb[9].mxu1 }
 0x1ec   : > { %1014 = vst.msk [vmem:[%s3024_s30 + $0x20] sm:$0xff] %vm754_vm1, %v1002_v2  ;;  %v1003_v20 = vmul.f32 %v972_v5, %v943_v3  ;;  %v862_v57 = vmax.f32 %v839_v11, 0.0  ;;  %v2360_v13 = vpop.f32.mrb[10].mxu1 }
 0x1ed   : > { %1017 = vst.msk [vmem:[%s3024_s30 + $0x38] sm:$0xff] %vm754_vm1, %v1005_v10  ;;  %v876_v53 = vmin.f32 %v864_v21, 1.0  ;;  %v865_v6 = vmax.f32 %v2360_v13, 0.0  ;;  %v842_v52 = vpop.f32.mrb[11].mxu1 }
 0x1ee   : > { %1015 = vst.msk [vmem:[%s3024_s30 + $0x28] sm:$0xff] %vm754_vm1, %v1003_v20  ;;  %v874_v14 = vmin.f32 %v862_v57, 1.0  ;;  %v863_v7 = vmax.f32 %v842_v52, 0.0 }
 0x1ef   : > { %v877_v15 = vmin.f32 %v865_v6, 1.0  ;;  %v948_v43 = vsub.f32 %v876_v53, %v2935_v29 }
 0x1f0   : > { %v946_v5 = vsub.f32 %v874_v14, %v2922_v24  ;;  %v875_v16 = vmin.f32 %v863_v7, 1.0 }
 0x1f1   : > { %v1008_v22 = vmul.f32 %v992_v12, %v948_v43  ;;  %v949_v23 = vsub.f32 %v877_v15, %v3003_v27 }
 0x1f2   : > { %v1006_v25 = vmul.f32 %v984_v63, %v946_v5  ;;  %v947_v28 = vsub.f32 %v875_v16, %v2993_v55  ;;  %v2375_v30 = vpop.f32.mrb[12].mxu1  ;;  %v2529_v55 = vld [vmem:[%s3240_s8] sm:$0xff]  }
 0x1f3   : > { %1020 = vst.msk [vmem:[%s3024_s30 + $0x50] sm:$0xff] %vm754_vm1, %v1008_v22  ;;  %v1009_v32 = vmul.f32 %v996_v17, %v949_v23  ;;  %v1132_v40 = vpop.f32.mrb[13].mxu1 }
 0x1f4   : > { %1018 = vst.msk [vmem:[%s3024_s30 + $0x40] sm:$0xff] %vm754_vm1, %v1006_v25  ;;  %v1007_v29 = vmul.f32 %v988_v9, %v947_v28  ;;  %v2376_v24 = vpop.f32.mrb[14].mxu1  ;;  %v1359_v25 = vpop.permute.xlu1 %1358 }
 0x1f5   : > { %1021 = vst.msk [vmem:[%s3024_s30 + $0x58] sm:$0xff] %vm754_vm1, %v1009_v32  ;;  %v1180_v59 = vpack.c.bf16 %v2376_v24, %v2375_v30  ;;  %v1135_v44 = vpop.f32.mrb[15].mxu1 }
 0x1f6   : > { %1019 = vst.msk [vmem:[%s3024_s30 + $0x48] sm:$0xff] %vm754_vm1, %v1007_v29  ;;  %v1179_v27 = vpack.c.bf16 %v1135_v44, %v1132_v40 }
 0x1f8   : > { %2389 = vmatprep.mubr.msk.bf16.mxu0 %vm754_vm1, %v1179_v27  ;;  %v1369_v28 = vpop.permute.xlu1 %1368 }
 0x1f9   : > { %2390 = vmatmul.mubr.msk.bf16.vlgmr.msra.gmra.mrb[12].mxu0 %vm754_vm1, %v1180_v59 }
 0x1fa   : > { %v2379_v45 = vpop.f32.mrb[16].mxu1  ;;  %2426 = vmatpush3.bf16.msra.mxu0 %v2529_v55 }
 0x1fb   : > { %v1148_v49 = vpop.f32.mrb[17].mxu1  ;;  %2427 = vmatprep.subr.bf16.mxu0 %v2543_v8 }
 0x1fc   : > { %v2380_v51 = vpop.f32.mrb[18].mxu1  ;;  %v1374_v30 = vpop.permute.xlu1 %1373 }
 0x1fd   : > { %v1182_v33 = vpack.c.bf16 %v2380_v51, %v2379_v45  ;;  %v1151_v19 = vpop.f32.mrb[19].mxu1  ;;  %v1430_v51 = vpop.permute.xlu0 %1429 }
 0x1fe   : > { %v1181_v35 = vpack.c.bf16 %v1151_v19, %v1148_v49  ;;  %2428 = vmatpush3.bf16.msra.mxu0 %v2530_v18 }
 0x1ff   : > { %2465 = vmatprep.subr.bf16.mxu0 %v2543_v8 }
 0x200   : > { %2393 = vmatprep.mubr.msk.bf16.mxu0 %vm754_vm1, %v1181_v35  ;;  %v3100_v32 = vpop.permute.xlu1 %1383 }
 0x201   : > { %2394 = vmatmul.mubr.msk.bf16.gmra.mrb[16].mxu0 %vm754_vm1, %v1182_v33  ;;  %v1442_v19 = vpop.permute.xlu0 %1441 }
 0x202   : > { %v2383_v47 = vpop.f32.mrb[20].mxu1 }
 0x203   : > { %v1164_v37 = vpop.f32.mrb[21].mxu1 }
 0x204   : > { %v2384_v48 = vpop.f32.mrb[22].mxu1  ;;  %v3102_v40 = vpop.permute.xlu1 %1393 }
 0x205   : > { %v1184_v39 = vpack.c.bf16 %v2384_v48, %v2383_v47  ;;  %v1167_v61 = vpop.f32.mrb[23].mxu1 }
 0x206   : > { %v1183_v62 = vpack.c.bf16 %v1167_v61, %v1164_v37 }
 0x208   : > { %2397 = vmatprep.mubr.msk.bf16.mxu0 %vm754_vm1, %v1183_v62 }
 0x209   : > { %2398 = vmatmul.mubr.msk.bf16.gmra.mrb[20].mxu0 %vm754_vm1, %v1184_v39 }
 0x20a   : > { %v1574_v41 = vpop.f32.mrb[24].mxu1  ;;  %2429 = vmatprep.mubr.msk.bf16.mxu0 %vm2544_vm2, %v2543_v8 }
 0x20b   : > { %v2415_v60 = vpop.f32.mrb[25].mxu1 }
 0x20c   : > { %v1577_v63 = vpop.f32.mrb[26].mxu1 }
 0x20d   : > { %v1597_v0 = vpack.c.bf16 %v1577_v63, %v1574_v41  ;;  %v2416_v1 = vpop.f32.mrb[27].mxu1 }
 0x211   : > { %2430 = vmatmul.mubr.msk.bf16.vlgmr.msra.gmra.mrb[24].mxu0 %vm754_vm1, %v1597_v0 }
 0x212   : > { %v1582_v2 = vpop.f32.mrb[28].mxu1  ;;  %2466 = vmatpush3.bf16.msra.mxu0 %v2930_v26  ;;  %2433 = vmatprep.mubr.msk.bf16.mxu0 %vm2544_vm2, %v2543_v8 }
 0x213   : > { %v2419_v3 = vpop.f32.mrb[29].mxu1  ;;  %2467 = vmatprep.subr.bf16.mxu0 %v2543_v8 }
 0x214   : > { %v1585_v4 = vpop.f32.mrb[30].mxu1  ;;  %v3124_v3 = vpop.permute.xlu0 %1449 }
 0x215   : > { %v1598_v9 = vpack.c.bf16 %v1585_v4, %v1582_v2  ;;  %v2420_v10 = vpop.f32.mrb[31].mxu1 }
 0x216   : > { %2468 = vmatpush3.bf16.msra.mxu0 %v2952_v38 }
 0x219   : > { %2434 = vmatmul.mubr.msk.bf16.gmra.mrb[28].mxu0 %vm754_vm1, %v1598_v9 }
 0x21a   : > { %v1590_v21 = vpop.f32.mrb[32].mxu1  ;;  %2437 = vmatprep.mubr.msk.bf16.mxu0 %vm2544_vm2, %v2543_v8 }
 0x21b   : > { %v2423_v11 = vpop.f32.mrb[33].mxu1 }
 0x21c   : > { %v1593_v20 = vpop.f32.mrb[34].mxu1 }
 0x21d   : > { %v1599_v26 = vpack.c.bf16 %v1593_v20, %v1590_v21  ;;  %v2424_v57 = vpop.f32.mrb[35].mxu1 }
 0x221   : > { %2438 = vmatmul.mubr.msk.bf16.gmra.mrb[32].mxu0 %vm754_vm1, %v1599_v26 }
 0x222   : > { %v1837_v13 = vpop.f32.mrb[36].mxu1  ;;  %2469 = vmatprep.mubr.msk.bf16.mxu0 %vm2544_vm2, %v2543_v8 }
 0x223   : > { %v2455_v53 = vpop.f32.mrb[37].mxu1 }
 0x224   : > { %v1840_v6 = vpop.f32.mrb[38].mxu1 }
 0x225   : > { %v1860_v52 = vpack.c.bf16 %v1840_v6, %v1837_v13  ;;  %v2456_v38 = vpop.f32.mrb[39].mxu1 }
 0x229   : > { %2470 = vmatmul.mubr.msk.bf16.vlgmr.msra.gmra.mrb[36].mxu0 %vm754_vm1, %v1860_v52 }
 0x22a   : > { %v1845_v14 = vpop.f32.mrb[40].mxu1  ;;  %2473 = vmatprep.mubr.msk.bf16.mxu0 %vm2544_vm2, %v2543_v8  ;;  %v3104_v8 = vpop.permute.xlu1 %1403 }
 0x22b   : > { %v2459_v7 = vpop.f32.mrb[41].mxu1 }
 0x22c   : > { %v1848_v12 = vpop.f32.mrb[42].mxu1 }
 0x22d   : > { %v1861_v15 = vpack.c.bf16 %v1848_v12, %v1845_v14  ;;  %v2460_v43 = vpop.f32.mrb[43].mxu1 }
 0x22e   : > { %v3106_v29 = vpop.permute.xlu1 %1413 }
 0x231   : > { %2474 = vmatmul.mubr.msk.bf16.gmra.mrb[40].mxu0 %vm754_vm1, %v1861_v15 }
 0x232   : > { %v1853_v5 = vpop.f32.mrb[44].mxu1  ;;  %v1434_v24 = vpop.permute.xlu1 %1433 }
 0x233   : > { %v2463_v16 = vpop.f32.mrb[45].mxu1 }
 0x234   : > { %v1856_v17 = vpop.f32.mrb[46].mxu1 }
 0x235   : > { %v1862_v22 = vpack.c.bf16 %v1856_v17, %v1853_v5  ;;  %v2464_v23 = vpop.f32.mrb[47].mxu1 }
 0x236   : > { %v1438_v59 = vpop.permute.xlu1 %1437 }
 0x237   : > { %2478 = vmatmul.mubr.msk.bf16.vlgmr.msra.gmra.mrb[48].mxu1 %vm754_vm1, %v1862_v22 }
 0x23a   : > { %v3108_v44 = vpop.permute.xlu1 %1445 }
 0x23e   : > { %v3110_v27 = vpop.permute.xlu1 %1453 }
 0x242   : > { %v3112_v55 = vpop.permute.xlu1 %1461 }
 0x246   : > { %v3114_v45 = vpop.permute.xlu1 %1469 }
 0x24a   : > { %v3116_v18 = vpop.permute.xlu1 %1692 }
 0x24e   : > { %v3118_v49 = vpop.permute.xlu1 %1702 }
 0x252   : > { %v3120_v33 = vpop.permute.xlu1 %1707 }
 0x256   : > { %v3122_v60 = vpop.permute.xlu1 %1717 }
 0x25a   : > { %v3132_v12 = vpop.permute.xlu1 %1955 }
 0x2cc   : > { %v2391_v35 = vpop.f32.mrb[12].mxu0 }
 0x2cd   : > { %v1298_v47 = vmax.f32 %v2391_v35, 0.0  ;;  %v1249_v37 = vpop.f32.mrb[13].mxu0 }
 0x2ce   : > { %v1296_v48 = vmax.f32 %v1249_v37, 0.0  ;;  %v2392_v39 = vpop.f32.mrb[14].mxu0 }
 0x2cf   : > { %v1310_v61 = vmin.f32 %v1298_v47, 1.0  ;;  %v1299_v62 = vmax.f32 %v2392_v39, 0.0  ;;  %v1252_v41 = vpop.f32.mrb[15].mxu0 }
 0x2d0   : > { %v1308_v63 = vmin.f32 %v1296_v48, 1.0  ;;  %v1297_v0 = vmax.f32 %v1252_v41, 0.0 }
 0x2d1   : > { %vm1322_vm3 = vcmp.gt.f32.partialorder %v1310_v61, 0.5019608  ;;  %v1334_v1 = vsub.f32 1.0, %v1310_v61  ;;  %v1311_v2 = vmin.f32 %v1299_v62, 1.0 }
 0x2d2   : > { %vm1320_vm4 = vcmp.gt.f32.partialorder %v1308_v63, 0.5019608  ;;  %v1332_v4 = vsub.f32 1.0, %v1308_v63  ;;  %v1309_v9 = vmin.f32 %v1297_v0, 1.0 }
 0x2d3   : > { %v1346_v10 = vsel %vm1322_vm3, %v1334_v1, %v1310_v61  ;;  %vm1323_vm5 = vcmp.gt.f32.partialorder %v1311_v2, 0.5019608  ;;  %v1335_v21 = vsub.f32 1.0, %v1311_v2  ;;  %v3144_v61 = vpop.permute.xlu1 %1960 }
 0x2d4   : > { %v1418_v11 = vsub.f32 %v1346_v10, %v1369_v28  ;;  %v1344_v20 = vsel %vm1320_vm4, %v1332_v4, %v1308_v63  ;;  %vm1321_vm6 = vcmp.gt.f32.partialorder %v1309_v9, 0.5019608  ;;  %v1333_v26 = vsub.f32 1.0, %v1309_v9  ;;  %v2395_v57 = vpop.f32.mrb[16].mxu0 }
 0x2d5   : > { %v1416_v13 = vsub.f32 %v1344_v20, %v1359_v25  ;;  %v1347_v53 = vsel %vm1323_vm5, %v1335_v21, %v1311_v2  ;;  %v1302_v6 = vmax.f32 %v2395_v57, 0.0  ;;  %v1265_v52 = vpop.f32.mrb[17].mxu0  ;;  %v1458_v25 = vpop.permute.xlu0 %1457 }
 0x2d6   : > { %v1478_v38 = vmul.f32 %v1438_v59, %v1418_v11  ;;  %v1419_v14 = vsub.f32 %v1347_v53, %v1374_v30  ;;  %v1345_v7 = vsel %vm1321_vm6, %v1333_v26, %v1309_v9  ;;  %v1300_v15 = vmax.f32 %v1265_v52, 0.0  ;;  %v2396_v43 = vpop.f32.mrb[18].mxu0 }
 0x2d7   : > { %v1476_v5 = vmul.f32 %v1430_v51, %v1416_v13  ;;  %v1417_v16 = vsub.f32 %v1345_v7, %v2942_v31  ;;  %v1314_v17 = vmin.f32 %v1302_v6, 1.0  ;;  %v1303_v22 = vmax.f32 %v2396_v43, 0.0  ;;  %v1268_v23 = vpop.f32.mrb[19].mxu0 }
 0x2d8   : > { %1490 = vst.msk [vmem:[%s3130_s24 + $0x10] sm:$0xff] %vm754_vm1, %v1478_v38  ;;  %v1479_v28 = vmul.f32 %v1442_v19, %v1419_v14  ;;  %v1312_v59 = vmin.f32 %v1300_v15, 1.0  ;;  %v1301_v35 = vmax.f32 %v1268_v23, 0.0 }
 0x2d9   : > { %1488 = vst.msk [vmem:[%s3130_s24] sm:$0xff] %vm754_vm1, %v1476_v5  ;;  %v1477_v30 = vmul.f32 %v1434_v24, %v1417_v16  ;;  %vm1326_vm7 = vcmp.gt.f32.partialorder %v1314_v17, 0.5019608  ;;  %v1338_v47 = vsub.f32 1.0, %v1314_v17  ;;  %v1315_v37 = vmin.f32 %v1303_v22, 1.0  ;;  %v1466_v4 = vpop.permute.xlu0 %1465 }
 0x2da   : > { %1491 = vst.msk [vmem:[%s3130_s24 + $0x18] sm:$0xff] %vm754_vm1, %v1479_v28  ;;  %vm1324_vm8 = vcmp.gt.f32.partialorder %v1312_v59, 0.5019608  ;;  %v1336_v31 = vsub.f32 1.0, %v1312_v59  ;;  %v1313_v51 = vmin.f32 %v1301_v35, 1.0 }
 0x2db   : > { %1489 = vst.msk [vmem:[%s3130_s24 + $0x8] sm:$0xff] %vm754_vm1, %v1477_v30  ;;  %v1350_v48 = vsel %vm1326_vm7, %v1338_v47, %v1314_v17  ;;  %vm1327_vm9 = vcmp.gt.f32.partialorder %v1315_v37, 0.5019608  ;;  %v1339_v39 = vsub.f32 1.0, %v1315_v37 }
 0x2dc   : > { %v1422_v19 = vsub.f32 %v1350_v48, %v2958_v42  ;;  %v1348_v62 = vsel %vm1324_vm8, %v1336_v31, %v1312_v59  ;;  %vm1325_vm10 = vcmp.gt.f32.partialorder %v1313_v51, 0.5019608  ;;  %v1337_v24 = vsub.f32 1.0, %v1313_v51  ;;  %v2399_v41 = vpop.f32.mrb[20].mxu0 }
 0x2dd   : > { %v1420_v63 = vsub.f32 %v1348_v62, %v2947_v36  ;;  %v1351_v0 = vsel %vm1327_vm9, %v1339_v39, %v1315_v37  ;;  %v1306_v1 = vmax.f32 %v2399_v41, 0.0  ;;  %v1281_v2 = vpop.f32.mrb[21].mxu0  ;;  %v1474_v43 = vpop.permute.xlu0 %1473 }
 0x2de   : > { %v1482_v9 = vmul.f32 %v3110_v27, %v1422_v19  ;;  %v1423_v10 = vsub.f32 %v1351_v0, %v3102_v40  ;;  %v1349_v21 = vsel %vm1325_vm10, %v1337_v24, %v1313_v51  ;;  %v1304_v42 = vmax.f32 %v1281_v2, 0.0  ;;  %v2400_v11 = vpop.f32.mrb[22].mxu0 }
 0x2df   : > { %v1480_v20 = vmul.f32 %v3108_v44, %v1420_v63  ;;  %v1421_v26 = vsub.f32 %v1349_v21, %v3100_v32  ;;  %v1318_v57 = vmin.f32 %v1306_v1, 1.0  ;;  %v1307_v13 = vmax.f32 %v2400_v11, 0.0  ;;  %v1284_v36 = vpop.f32.mrb[23].mxu0  ;;  %v3158_v44 = vpop.permute.xlu1 %1970 }
 0x2e0   : > { %1494 = vst.msk [vmem:[%s3130_s24 + $0x30] sm:$0xff] %vm754_vm1, %v1482_v9  ;;  %v1483_v53 = vmul.f32 %v1458_v25, %v1423_v10  ;;  %v1316_v6 = vmin.f32 %v1304_v42, 1.0  ;;  %v1305_v52 = vmax.f32 %v1284_v36, 0.0 }
 0x2e1   : > { %1492 = vst.msk [vmem:[%s3130_s24 + $0x20] sm:$0xff] %vm754_vm1, %v1480_v20  ;;  %v1481_v40 = vmul.f32 %v3124_v3, %v1421_v26  ;;  %vm1330_vm11 = vcmp.gt.f32.partialorder %v1318_v57, 0.5019608  ;;  %v1342_v27 = vsub.f32 1.0, %v1318_v57  ;;  %v1319_v38 = vmin.f32 %v1307_v13, 1.0  ;;  %v1728_v62 = vpop.permute.xlu0 %1727 }
 0x2e2   : > { %1495 = vst.msk [vmem:[%s3130_s24 + $0x38] sm:$0xff] %vm754_vm1, %v1483_v53  ;;  %vm1328_vm12 = vcmp.gt.f32.partialorder %v1316_v6, 0.5019608  ;;  %v1340_v32 = vsub.f32 1.0, %v1316_v6  ;;  %v1317_v14 = vmin.f32 %v1305_v52, 1.0 }
 0x2e3   : > { %1493 = vst.msk [vmem:[%s3130_s24 + $0x28] sm:$0xff] %vm754_vm1, %v1481_v40  ;;  %v1354_v7 = vsel %vm1330_vm11, %v1342_v27, %v1318_v57  ;;  %vm1331_vm13 = vcmp.gt.f32.partialorder %v1319_v38, 0.5019608  ;;  %v1343_v15 = vsub.f32 1.0, %v1319_v38  ;;  %v3171_v48 = vpop.permute.xlu1 %1975 }
 0x2e4   : > { %v1426_v5 = vsub.f32 %v1354_v7, %v2967_v50  ;;  %v1352_v3 = vsel %vm1328_vm12, %v1340_v32, %v1316_v6  ;;  %vm1329_vm14 = vcmp.gt.f32.partialorder %v1317_v14, 0.5019608  ;;  %v1341_v16 = vsub.f32 1.0, %v1317_v14  ;;  %v1655_v17 = vpop.f32.mrb[24].mxu0 }
 0x2e5   : > { %v1424_v22 = vsub.f32 %v1352_v3, %v2962_v46  ;;  %v1355_v23 = vsel %vm1331_vm13, %v1343_v15, %v1319_v38  ;;  %v1678_v25 = vmax.f32 %v1655_v17, 0.0  ;;  %v2431_v28 = vpop.f32.mrb[25].mxu0  ;;  %v1736_v42 = vpop.permute.xlu0 %1735 }
 0x2e6   : > { %v1486_v59 = vmul.f32 %v3114_v45, %v1426_v5  ;;  %v1427_v35 = vsub.f32 %v1355_v23, %v3106_v29  ;;  %v1353_v30 = vsel %vm1329_vm14, %v1341_v16, %v1317_v14  ;;  %v1658_v50 = vpop.f32.mrb[26].mxu0 }
 0x2e7   : > { %v1484_v47 = vmul.f32 %v3112_v55, %v1424_v22  ;;  %v1425_v37 = vsub.f32 %v1353_v30, %v3104_v8  ;;  %v1684_v31 = vmin.f32 %v1678_v25, 1.0  ;;  %v1679_v46 = vmax.f32 %v1658_v50, 0.0  ;;  %v2432_v51 = vpop.f32.mrb[27].mxu0  ;;  %v1732_v24 = vpop.permute.xlu1 %1731 }
 0x2e8   : > { %1498 = vst.msk [vmem:[%s3130_s24 + $0x50] sm:$0xff] %vm754_vm1, %v1486_v59  ;;  %v1487_v45 = vmul.f32 %v1474_v43, %v1427_v35 }
 0x2e9   : > { %1496 = vst.msk [vmem:[%s3130_s24 + $0x40] sm:$0xff] %vm754_vm1, %v1484_v47  ;;  %v1485_v29 = vmul.f32 %v1466_v4, %v1425_v37  ;;  %v1720_v39 = vsub.f32 %v1684_v31, %v3116_v18  ;;  %v1685_v19 = vmin.f32 %v1679_v46, 1.0  ;;  %v1748_v14 = vpop.permute.xlu0 %1747 }
 0x2ea   : > { %1499 = vst.msk [vmem:[%s3130_s24 + $0x58] sm:$0xff] %vm754_vm1, %v1487_v45 }
 0x2eb   : > { %1497 = vst.msk [vmem:[%s3130_s24 + $0x48] sm:$0xff] %vm754_vm1, %v1485_v29  ;;  %v1750_v8 = vmul.f32 %v1728_v62, %v1720_v39  ;;  %v1721_v55 = vsub.f32 %v1685_v19, %v2979_v34  ;;  %v1740_v20 = vpop.permute.xlu1 %1739 }
 0x2ec   : > { %v1663_v18 = vpop.f32.mrb[28].mxu0 }
 0x2ed   : > { %1757 = vst.msk [vmem:[%s3183_s28] sm:$0xff] %vm1756_vm15, %v1750_v8  ;;  %v1751_v41 = vmul.f32 %v1732_v24, %v1721_v55  ;;  %v1680_v63 = vmax.f32 %v1663_v18, 0.0  ;;  %v2435_v0 = vpop.f32.mrb[29].mxu0  ;;  %v1995_v59 = vpop.permute.xlu0 %1994 }
 0x2ee   : > { %v1666_v1 = vpop.f32.mrb[30].mxu0 }
 0x2ef   : > { %1758 = vst.msk [vmem:[%s3183_s28 + $0x8] sm:$0xff] %vm1756_vm15, %v1751_v41  ;;  %v1686_v2 = vmin.f32 %v1680_v63, 1.0  ;;  %v1681_v4 = vmax.f32 %v1666_v1, 0.0  ;;  %v2436_v9 = vpop.f32.mrb[31].mxu0  ;;  %v1744_v38 = vpop.permute.xlu1 %1743 }
 0x2f1   : > { %v1722_v10 = vsub.f32 %v1686_v2, %v3118_v49  ;;  %v1687_v21 = vmin.f32 %v1681_v4, 1.0  ;;  %v2003_v55 = vpop.permute.xlu0 %2002 }
 0x2f3   : > { %v1752_v34 = vmul.f32 %v1736_v42, %v1722_v10  ;;  %v1723_v11 = vsub.f32 %v1687_v21, %v3120_v33  ;;  %v1991_v25 = vpop.permute.xlu1 %1990 }
 0x2f4   : > { %v1671_v26 = vpop.f32.mrb[32].mxu0 }
 0x2f5   : > { %1759 = vst.msk [vmem:[%s3183_s28 + $0x10] sm:$0xff] %vm1756_vm15, %v1752_v34  ;;  %v1753_v57 = vmul.f32 %v1740_v20, %v1723_v11  ;;  %v1682_v13 = vmax.f32 %v1671_v26, 0.0  ;;  %v2439_v36 = vpop.f32.mrb[33].mxu0  ;;  %v2011_v9 = vpop.permute.xlu0 %2010 }
 0x2f6   : > { %v1674_v53 = vpop.f32.mrb[34].mxu0 }
 0x2f7   : > { %1760 = vst.msk [vmem:[%s3183_s28 + $0x18] sm:$0xff] %vm1756_vm15, %v1753_v57  ;;  %v1688_v6 = vmin.f32 %v1682_v13, 1.0  ;;  %v1683_v52 = vmax.f32 %v1674_v53, 0.0  ;;  %v2440_v49 = vpop.f32.mrb[35].mxu0  ;;  %v1999_v29 = vpop.permute.xlu1 %1998 }
 0x2f9   : > { %v1724_v40 = vsub.f32 %v1688_v6, %v2987_v54  ;;  %v1689_v27 = vmin.f32 %v1683_v52, 1.0 }
 0x2fb   : > { %v1754_v33 = vmul.f32 %v1744_v38, %v1724_v40  ;;  %v1725_v32 = vsub.f32 %v1689_v27, %v3122_v60  ;;  %v2007_v2 = vpop.permute.xlu1 %2006 }
 0x2fc   : > { %v1918_v7 = vpop.f32.mrb[36].mxu0 }
 0x2fd   : > { %1761 = vst.msk [vmem:[%s3183_s28 + $0x20] sm:$0xff] %vm1756_vm15, %v1754_v33  ;;  %v1755_v15 = vmul.f32 %v1748_v14, %v1725_v32  ;;  %v1941_v43 = vmax.f32 %v1918_v7, 0.0  ;;  %v2471_v5 = vpop.f32.mrb[37].mxu0 }
 0x2fe   : > { %v1921_v3 = vpop.f32.mrb[38].mxu0 }
 0x2ff   : > { %1762 = vst.msk [vmem:[%s3183_s28 + $0x28] sm:$0xff] %vm1756_vm15, %v1755_v15  ;;  %v1947_v16 = vmin.f32 %v1941_v43, 1.0  ;;  %v1942_v17 = vmax.f32 %v1921_v3, 0.0  ;;  %v2472_v22 = vpop.f32.mrb[39].mxu0 }
 0x301   : > { %v1983_v54 = vsub.f32 %v1947_v16, %v3132_v12  ;;  %v1948_v23 = vmin.f32 %v1942_v17, 1.0 }
 0x303   : > { %v2013_v60 = vmul.f32 %v1991_v25, %v1983_v54  ;;  %v1984_v28 = vsub.f32 %v1948_v23, %v3144_v61 }
 0x304   : > { %v1926_v35 = vpop.f32.mrb[40].mxu0 }
 0x305   : > { %2019 = vst.msk [vmem:[%s3210_s0] sm:$0xff] %vm1756_vm15, %v2013_v60  ;;  %v2014_v30 = vmul.f32 %v1995_v59, %v1984_v28  ;;  %v1943_v50 = vmax.f32 %v1926_v35, 0.0  ;;  %v2475_v12 = vpop.f32.mrb[41].mxu0 }
 0x306   : > { %v1929_v47 = vpop.f32.mrb[42].mxu0 }
 0x307   : > { %2020 = vst.msk [vmem:[%s3210_s0 + $0x8] sm:$0xff] %vm1756_vm15, %v2014_v30  ;;  %v1949_v37 = vmin.f32 %v1943_v50, 1.0  ;;  %v1944_v31 = vmax.f32 %v1929_v47, 0.0  ;;  %v2476_v46 = vpop.f32.mrb[43].mxu0 }
 0x309   : > { %v1985_v51 = vsub.f32 %v1949_v37, %v2998_v56  ;;  %v1950_v45 = vmin.f32 %v1944_v31, 1.0 }
 0x30a   : > { %v1934_v61 = vpop.f32.mrb[48].mxu1 }
 0x30b   : > { %v2015_v39 = vmul.f32 %v1999_v29, %v1985_v51  ;;  %v1986_v19 = vsub.f32 %v1950_v45, %v3158_v44  ;;  %v1945_v62 = vmax.f32 %v1934_v61, 0.0  ;;  %v2479_v8 = vpop.f32.mrb[49].mxu1 }
 0x30c   : > { %v1937_v24 = vpop.f32.mrb[50].mxu1 }
 0x30d   : > { %2021 = vst.msk [vmem:[%s3210_s0 + $0x10] sm:$0xff] %vm1756_vm15, %v2015_v39  ;;  %v2016_v18 = vmul.f32 %v2003_v55, %v1986_v19  ;;  %v1951_v41 = vmin.f32 %v1945_v62, 1.0  ;;  %v1946_v63 = vmax.f32 %v1937_v24, 0.0  ;;  %v2480_v0 = vpop.f32.mrb[51].mxu1 }
 0x30f   : > { %2022 = vst.msk [vmem:[%s3210_s0 + $0x18] sm:$0xff] %vm1756_vm15, %v2016_v18  ;;  %v1987_v56 = vsub.f32 %v1951_v41, %v3171_v48  ;;  %v1952_v1 = vmin.f32 %v1946_v63, 1.0 }
 0x311   : > { %v2017_v4 = vmul.f32 %v2007_v2, %v1987_v56  ;;  %v1988_v44 = vsub.f32 %v1952_v1, %v3005_v58 }
 0x313   : > { %2023 = vst.msk [vmem:[%s3210_s0 + $0x20] sm:$0xff] %vm1756_vm15, %v2017_v4  ;;  %v2018_v10 = vmul.f32 %v2011_v9, %v1988_v44 }
 0x315   : > { %2024 = vst.msk [vmem:[%s3210_s0 + $0x28] sm:$0xff] %vm1756_vm15, %v2018_v10 }
 0x316 PF: > { %s27_s21 = sadd.s32 1, %s2539_s21  }
 0x317   : > { %p24_p4 = scmp.ge.s32.totalorder %s27_s21, 4  }
 0x319   :  { %26 = sbr.rel (!%p24_p4) target bundleno = 2 (0x2), region = 138 }

</bundles_post_ra>
